<compile_context>
chip_gen: v6e
topology: v6e:2x2x1
jax: 0.10.0
libtpu: 0.0.40
codegen_flags: <defaults>
</compile_context>

<pallas_src>
import functools

import jax
import jax.numpy as jnp
from jax import lax
from jax.experimental import pallas as pl
from jax.experimental.pallas import tpu as pltpu


# ----------------------------------------------------------------------------
# Pallas kernel: one batch image per grid step.
#   x_ref : (Hp*Wp, Cin)      flattened zero-padded NHWC input (leading dim
#                             squeezed by BlockSpec)
#   w_ref : (9*Cin, Cout_p)   per-tap dense weights, 1x1 convs folded in,
#                             Cout padded to a multiple of 128
#   b_ref : (1, Cout_p)       fused bias (padded)
#   o_ref : (H*Wp, Cout_p)    flat output (columns >= W of each padded row are
#                             garbage and stripped in the wrapper)
# ----------------------------------------------------------------------------
def _hetconv_kernel(x_ref, w_ref, b_ref, o_ref, *, H, Wp):
    HWp = H * Wp
    # im2col: tap (ky, kx) of the 3x3 window is the flattened padded input
    # shifted by ky*Wp + kx rows (static offsets, leading-axis only).
    cols = [
        x_ref[pl.ds(ky * Wp + kx, HWp), :]
        for ky in range(3)
        for kx in range(3)
    ]
    a = jnp.concatenate(cols, axis=-1)                     # (H*Wp, 9*Cin)
    acc = jnp.dot(a, w_ref[...], preferred_element_type=jnp.float32)
    o_ref[...] = (acc + b_ref[...]).astype(o_ref.dtype)


def hetconv2d_pallas(x_nchw, w_taps, bias):
    """x_nchw: (N, Cin, H, W) f32; w_taps: (9, Cin, Cout); bias: (Cout,)."""
    N, Cin, H, W = x_nchw.shape
    Cout = w_taps.shape[-1]
    Wp = W + 2                      # width pad 1 each side
    Hp = H + 3                      # height pad: 1 top, 2 bottom (the extra
                                    # row keeps the flat-shift reads of the
                                    # discarded wrap columns in-bounds)
    Cout_p = ((Cout + 127) // 128) * 128     # lane-dense output / MXU N dim

    # One fused copy pass: NCHW -> NHWC, zero-pad, flatten (H, W) -> H*W.
    x_flat = jnp.pad(
        jnp.transpose(x_nchw, (0, 2, 3, 1)),
        ((0, 0), (1, 2), (1, 1), (0, 0)),
    ).reshape(N, Hp * Wp, Cin)

    # Weights: pad Cout to 128 with zero columns, fuse tap axis into K.
    w_flat = jnp.pad(
        w_taps, ((0, 0), (0, 0), (0, Cout_p - Cout))
    ).reshape(9 * Cin, Cout_p)
    b_flat = jnp.pad(bias, (0, Cout_p - Cout)).reshape(1, Cout_p)

    kernel = functools.partial(_hetconv_kernel, H=H, Wp=Wp)

    out_flat = pl.pallas_call(
        kernel,
        out_shape=jax.ShapeDtypeStruct((N, H * Wp, Cout_p), x_nchw.dtype),
        grid_spec=pltpu.PrefetchScalarGridSpec(
            num_scalar_prefetch=0,
            grid=(N,),
            in_specs=[
                pl.BlockSpec((None, Hp * Wp, Cin), lambda n: (n, 0, 0)),
                pl.BlockSpec((9 * Cin, Cout_p), lambda n: (0, 0)),
                pl.BlockSpec((1, Cout_p), lambda n: (0, 0)),
            ],
            out_specs=pl.BlockSpec((None, H * Wp, Cout_p),
                                   lambda n: (n, 0, 0)),
        ),
        compiler_params=pltpu.CompilerParams(
            dimension_semantics=("parallel",)),
    )(x_flat, w_flat, b_flat)

    # Strip the wrap columns (w >= W) and the Cout padding; back to NCHW.
    out = out_flat.reshape(N, H, Wp, Cout_p)[:, :, :W, :Cout]
    return jnp.transpose(out, (0, 3, 1, 2))


# ----------------------------------------------------------------------------
# Parameter construction (deterministic, mimics the shapes in __init__).
# ----------------------------------------------------------------------------
def expand_grouped(w, p):
    """(Cout, Cin//p, kh, kw) grouped conv weight -> dense (kh*kw, Cin, Cout)."""
    Cout, Cin_g, kh, kw = w.shape
    Cin = Cin_g * p
    assert Cout % p == 0, "out_channels must be divisible by p"
    cout_g = Cout // p
    dense = jnp.zeros((kh, kw, Cin, Cout), w.dtype)
    for g in range(p):
        blk = w[g * cout_g:(g + 1) * cout_g]              # (cout_g, Cin_g, kh, kw)
        blk = jnp.transpose(blk, (2, 3, 1, 0))            # (kh, kw, Cin_g, cout_g)
        dense = dense.at[:, :,
                         g * Cin_g:(g + 1) * Cin_g,
                         g * cout_g:(g + 1) * cout_g].set(blk)
    return dense.reshape(kh * kw, Cin, Cout)


def make_params(key, in_feats, out_feats, p):
    assert in_feats % p == 0 and out_feats % p == 0
    k = jax.random.split(key, 6)
    scale = 0.1
    w3 = scale * jax.random.normal(k[0], (out_feats, in_feats // p, 3, 3), jnp.float32)
    b3 = scale * jax.random.normal(k[1], (out_feats,), jnp.float32)
    w1g = scale * jax.random.normal(k[2], (out_feats, in_feats // p, 1, 1), jnp.float32)
    b1g = scale * jax.random.normal(k[3], (out_feats,), jnp.float32)
    w1 = scale * jax.random.normal(k[4], (out_feats, in_feats, 1, 1), jnp.float32)
    b1 = scale * jax.random.normal(k[5], (out_feats,), jnp.float32)
    return (w3, b3), (w1g, b1g), (w1, b1)


def fuse_params(params, p):
    (w3, b3), (w1g, b1g), (w1, b1) = params
    w_taps = expand_grouped(w3, p)                            # (9, Cin, Cout)
    w1_dense = jnp.transpose(w1[:, :, 0, 0], (1, 0))          # (Cin, Cout)
    w1g_dense = expand_grouped(w1g, p)[0]                     # (Cin, Cout)
    # Fold both 1x1 convs into the center tap (ky=1, kx=1 -> index 4).
    w_taps = w_taps.at[4].add(w1_dense - w1g_dense)
    bias = b3 + b1 - b1g
    return w_taps, bias


# ----------------------------------------------------------------------------
# Pure-JAX reference (lax convs) for correctness check.
# ----------------------------------------------------------------------------
def reference(x, params, p):
    (w3, b3), (w1g, b1g), (w1, b1) = params
    dn = ("NCHW", "OIHW", "NCHW")
    y3 = lax.conv_general_dilated(x, w3, (1, 1), ((1, 1), (1, 1)),
                                  dimension_numbers=dn, feature_group_count=p)
    y1g = lax.conv_general_dilated(x, w1g, (1, 1), ((0, 0), (0, 0)),
                                   dimension_numbers=dn, feature_group_count=p)
    y1 = lax.conv_general_dilated(x, w1, (1, 1), ((0, 0), (0, 0)),
                                  dimension_numbers=dn, feature_group_count=1)
    bb = lambda b: b.reshape(1, -1, 1, 1)
    return (y3 + bb(b3)) + (y1 + bb(b1)) - (y1g + bb(b1g))


if __name__ == "__main__":
    N, Cin, Cout, H, W, p = 2, 8, 8, 16, 16, 4

    key = jax.random.PRNGKey(0)
    kx, kp = jax.random.split(key)
    x = jax.random.normal(kx, (N, Cin, H, W), jnp.float32)

    params = make_params(kp, Cin, Cout, p)
    w_taps, bias = fuse_params(params, p)

    out = hetconv2d_pallas(x, w_taps, bias)
    out = jax.block_until_ready(out)

    ref = reference(x, params, p)
    assert out.shape == ref.shape
    if not jnp.allclose(out, ref, atol=1e-4, rtol=1e-4):
        raise AssertionError("Pallas output mismatch vs lax reference")

    print("KERNEL_OK")
</pallas_src>

<mosaic_0001>
module attributes {stable_mosaic.version = 11 : i64} {
  func.func @_hetconv_kernel(%arg0: i32, %arg1: memref<1x342x8xf32, #tpu.memory_space<vmem>>, %arg2: memref<72x128xf32, #tpu.memory_space<vmem>>, %arg3: memref<1x128xf32, #tpu.memory_space<vmem>>, %arg4: memref<1x288x128xf32, #tpu.memory_space<vmem>>) attributes {dimension_semantics = [#tpu.dimension_semantics<parallel>], iteration_bounds = array<i64: 2>, scalar_prefetch = 0 : i64, scratch_operands = 0 : i64, tpu.core_type = #tpu.core_type<tc>, window_params = [{transform_indices = @transform_0, window_bounds = array<i64: 1, 342, 8>}, {pipeline_mode = #tpu.pipeline_mode<synchronous>, transform_indices = @transform_1, window_bounds = array<i64: 72, 128>}, {pipeline_mode = #tpu.pipeline_mode<synchronous>, transform_indices = @transform_2, window_bounds = array<i64: 1, 128>}, {transform_indices = @transform_3, window_bounds = array<i64: 1, 288, 128>}]} {
    %c0 = arith.constant 0 : index
    %c0_0 = arith.constant 0 : index
    %c0_1 = arith.constant 0 : index
    %0 = vector.load %arg1[%c0, %c0_0, %c0_1] : memref<1x342x8xf32, #tpu.memory_space<vmem>>, vector<1x288x8xf32>
    %1 = vector.shape_cast %0 : vector<1x288x8xf32> to vector<288x8xf32>
    %c0_2 = arith.constant 0 : index
    %c1 = arith.constant 1 : index
    %c0_3 = arith.constant 0 : index
    %2 = vector.load %arg1[%c0_2, %c1, %c0_3] : memref<1x342x8xf32, #tpu.memory_space<vmem>>, vector<1x288x8xf32>
    %3 = vector.shape_cast %2 : vector<1x288x8xf32> to vector<288x8xf32>
    %c0_4 = arith.constant 0 : index
    %c2 = arith.constant 2 : index
    %c0_5 = arith.constant 0 : index
    %4 = vector.load %arg1[%c0_4, %c2, %c0_5] : memref<1x342x8xf32, #tpu.memory_space<vmem>>, vector<1x288x8xf32>
    %5 = vector.shape_cast %4 : vector<1x288x8xf32> to vector<288x8xf32>
    %c0_6 = arith.constant 0 : index
    %c18 = arith.constant 18 : index
    %c0_7 = arith.constant 0 : index
    %6 = vector.load %arg1[%c0_6, %c18, %c0_7] : memref<1x342x8xf32, #tpu.memory_space<vmem>>, vector<1x288x8xf32>
    %7 = vector.shape_cast %6 : vector<1x288x8xf32> to vector<288x8xf32>
    %c0_8 = arith.constant 0 : index
    %c19 = arith.constant 19 : index
    %c0_9 = arith.constant 0 : index
    %8 = vector.load %arg1[%c0_8, %c19, %c0_9] : memref<1x342x8xf32, #tpu.memory_space<vmem>>, vector<1x288x8xf32>
    %9 = vector.shape_cast %8 : vector<1x288x8xf32> to vector<288x8xf32>
    %c0_10 = arith.constant 0 : index
    %c20 = arith.constant 20 : index
    %c0_11 = arith.constant 0 : index
    %10 = vector.load %arg1[%c0_10, %c20, %c0_11] : memref<1x342x8xf32, #tpu.memory_space<vmem>>, vector<1x288x8xf32>
    %11 = vector.shape_cast %10 : vector<1x288x8xf32> to vector<288x8xf32>
    %c0_12 = arith.constant 0 : index
    %c36 = arith.constant 36 : index
    %c0_13 = arith.constant 0 : index
    %12 = vector.load %arg1[%c0_12, %c36, %c0_13] : memref<1x342x8xf32, #tpu.memory_space<vmem>>, vector<1x288x8xf32>
    %13 = vector.shape_cast %12 : vector<1x288x8xf32> to vector<288x8xf32>
    %c0_14 = arith.constant 0 : index
    %c37 = arith.constant 37 : index
    %c0_15 = arith.constant 0 : index
    %14 = vector.load %arg1[%c0_14, %c37, %c0_15] : memref<1x342x8xf32, #tpu.memory_space<vmem>>, vector<1x288x8xf32>
    %15 = vector.shape_cast %14 : vector<1x288x8xf32> to vector<288x8xf32>
    %c0_16 = arith.constant 0 : index
    %c38 = arith.constant 38 : index
    %c0_17 = arith.constant 0 : index
    %16 = vector.load %arg1[%c0_16, %c38, %c0_17] : memref<1x342x8xf32, #tpu.memory_space<vmem>>, vector<1x288x8xf32>
    %17 = vector.shape_cast %16 : vector<1x288x8xf32> to vector<288x8xf32>
    %18 = tpu.concatenate %1, %3, %5, %7, %9, %11, %13, %15, %17 in 1 : vector<288x8xf32>, vector<288x8xf32>, vector<288x8xf32>, vector<288x8xf32>, vector<288x8xf32>, vector<288x8xf32>, vector<288x8xf32>, vector<288x8xf32>, vector<288x8xf32> -> vector<288x72xf32>
    %c0_18 = arith.constant 0 : index
    %c0_19 = arith.constant 0 : index
    %19 = vector.load %arg2[%c0_18, %c0_19] : memref<72x128xf32, #tpu.memory_space<vmem>>, vector<72x128xf32>
    %cst = arith.constant dense<0.000000e+00> : vector<288x128xf32>
    %20 = tpu.matmul %18, %19, %cst {dimension_numbers = #tpu.dot_dimension_numbers<[1], [0], [0], [1], [0, 0, 1, 1], [], []>} : vector<288x72xf32>, vector<72x128xf32>, vector<288x128xf32> -> vector<288x128xf32>
    %c0_20 = arith.constant 0 : index
    %c0_21 = arith.constant 0 : index
    %21 = vector.load %arg3[%c0_20, %c0_21] : memref<1x128xf32, #tpu.memory_space<vmem>>, vector<1x128xf32>
    %22 = vector.broadcast %21 : vector<1x128xf32> to vector<288x128xf32>
    %23 = arith.addf %20, %22 : vector<288x128xf32>
    %c0_22 = arith.constant 0 : index
    %c0_23 = arith.constant 0 : index
    %c0_24 = arith.constant 0 : index
    %24 = vector.load %arg4[%c0_22, %c0_23, %c0_24] : memref<1x288x128xf32, #tpu.memory_space<vmem>>, vector<1x288x128xf32>
    %25 = vector.shape_cast %24 : vector<1x288x128xf32> to vector<288x128xf32>
    %26 = vector.shape_cast %23 : vector<288x128xf32> to vector<1x288x128xf32>
    tpu.vector_store %arg4[%c0_22, %c0_23, %c0_24], %26 {strides = array<i32>} : memref<1x288x128xf32, #tpu.memory_space<vmem>>, vector<1x288x128xf32>,
    return
  }
  func.func @transform_0(%arg0: i32) -> (i32, i32, i32) {
    %c0_i32 = arith.constant 0 : i32
    %c0_i32_0 = arith.constant 0 : i32
    %c0_i32_1 = arith.constant 0 : i32
    return %arg0, %c0_i32, %c0_i32_0 : i32, i32, i32
  }
  func.func @transform_1(%arg0: i32) -> (i32, i32) {
    %c0_i32 = arith.constant 0 : i32
    %c0_i32_0 = arith.constant 0 : i32
    %c0_i32_1 = arith.constant 0 : i32
    return %c0_i32, %c0_i32_0 : i32, i32
  }
  func.func @transform_2(%arg0: i32) -> (i32, i32) {
    %c0_i32 = arith.constant 0 : i32
    %c0_i32_0 = arith.constant 0 : i32
    %c0_i32_1 = arith.constant 0 : i32
    return %c0_i32, %c0_i32_0 : i32, i32
  }
  func.func @transform_3(%arg0: i32) -> (i32, i32, i32) {
    %c0_i32 = arith.constant 0 : i32
    %c0_i32_0 = arith.constant 0 : i32
    %c0_i32_1 = arith.constant 0 : i32
    return %arg0, %c0_i32, %c0_i32_0 : i32, i32, i32
  }
}

</mosaic_0001>

<bundles_post_ra>
// kernel: tpu_custom_call.1
= control target key start
LH: loop header
LB: loop body
LE: loop exit
PB: predicated region body
PF: predicated region fallthrough
CT: control target
= control target key end

     0   :  { %8 = vsyncpa [#allocation3], 0  ;;  %s4382_s0 = inlined_call_operand.vmem [shape: f32[2,342,8], index: 0, kind: input, shape index: {}]   ;;  %s4383_s1 = inlined_call_operand.vmem [shape: f32[72,128], index: 1, kind: input, shape index: {}]   ;;  %s4384_s2 = inlined_call_operand.vmem [shape: f32[1,128], index: 2, kind: input, shape index: {}]   ;;  %s4385_s3 = inlined_call_operand.hbm [shape: f32[2,288,128], index: 3, kind: output, shape index: {}]  }
   0x1   :  { %10 = vsyncpa [#allocation3 + $0x1], 0  ;;  %s2612_s12 = smov 0   ;;  %s2614_s13 = smov 0  }
   0x2   :  { %s2616_s14 = smov 0   ;;  %s2618_s15 = smov 0  }
   0x3 LB: > { %s2633_s16 = sadd.s32 4294967295, %s2580_s15   ;;  %s2287_s17 = sadd.s32 4294967294, %s2580_s15   ;;  %s2580_s15 = sphi %s2618_s15, %s4585_s15   ;;  %s2576_s14 = sphi %s2616_s14, %s4584_s14   ;;  %s2572_s13 = sphi %s2614_s13, %s4583_s13   ;;  %s2568_s12 = sphi %s2612_s12, %s4582_s12  }
   0x4   : > { %s2637_s18 = sadd.s32 1, %s2580_s15   ;;  %s91_s19 = sadd.s32 1, %s2576_s14 }
   0x5   : > { %s88_s20 = ssub.s32 %s2580_s15, %s2637_s18  ;;  %p101_p0 = scmp.ne.s32.totalorder %s2576_s14, %s2572_s13 }
   0x6   : > { %p89_p1 = scmp.eq.s32.totalorder %s88_s20, 0  ;;  %p102_p2 = scmp.eq.s32.totalorder %s2633_s16, 1 }
   0x7   : > { %p107_p3 = scmp.ne.s32.totalorder %s2572_s13, %s2568_s12  ;;  %p108_p4 = scmp.eq.s32.totalorder %s2287_s17, 1 }
   0x8   : > { %s2648_s21 = scalar_select %p89_p1, %s2576_s14, %s91_s19  }
   0x9   : > { %p2650_p5 = por %p102_p2, %p101_p0  ;;  %p2654_p6 = por %p108_p4, %p107_p3 }
   0xa   : > { %p2290_p7 = scmp.ge.s32.totalorder %s2580_s15, 1  ;;  %p140_p8 = scmp.lt.s32.totalorder %s2580_s15, 3 }
   0xc   : > { %p141_p9 = pnand %p2290_p7, %p140_p8 }
   0xe   : > { %144 = sbr.rel (%p141_p9) target bundleno = 926 (0x39e), region = 32 }
  0x13   : > { %p164_p10 = scmp.lt.s32.totalorder %s2633_s16, 1  ;;  %s2582_s29 = smov 8   ;;  %vm1509_vm0 = vcmask 64512   ;;  %vm1546_vm1 = vcmask 130048   ;;  %vm1583_vm2 = vcmask 195584   ;;  %vm1620_vm3 = vcmask 261120  }
  0x14   : > { %s2583_s30 = smov 16   ;;  %s2584_s4 = smov 24   ;;  %vm1657_vm4 = vcmask 326656   ;;  %vm1694_vm5 = vcmask 392192   ;;  %vm1731_vm6 = vcmask 457728   ;;  %vm1768_vm7 = vcmask 523264  }
  0x15   : > { %s165_s24 = scalar_select %p164_p10, %s2633_s16, 1  ;;  %vm1821_vm8 = vcmask 588800  }
  0x16   : > { %s2585_s5 = smov 32   ;;  %s2586_s6 = smov 40  }
  0x17   : > { %s2468_s25 = smul.u32 344, %s165_s24  ;;  %s2587_s24 = smov 48  }
  0x18   : > { %s2588_s8 = smov 56   ;;  %s2589_s19 = smov 64  }
  0x19   : > { %s2665_s28 = scalar_lea.vmem %s4382_s0, %s2468_s25 }
  0x1a   : > { %v207_v0 = vld [vmem:[%s2665_s28 + $0x11] sm:$0xff]  ;;  %v205_v1 = vld [vmem:[%s2665_s28 + $0x1] sm:$0xff]  ;;  %v208_v2 = vld [vmem:[%s2665_s28 + $0x19] sm:$0xff] }
  0x1b   : > { %465 = vrot.lane.b32.xlu1 %v207_v0, %s2582_s29  ;;  %461 = vrot.lane.b32.xlu0 %v205_v1, %s2582_s29  ;;  %v206_v3 = vld [vmem:[%s2665_s28 + $0x9] sm:$0xff]  ;;  %v209_v5 = vld [vmem:[%s2665_s28 + $0x21] sm:$0xff] }
  0x1c   : > { %v210_v4 = vld [vmem:[%s2665_s28 + $0x29] sm:$0xff]  ;;  %v212_v6 = vld [vmem:[%s2665_s28 + $0x39] sm:$0xff]  ;;  %v211_v7 = vld [vmem:[%s2665_s28 + $0x31] sm:$0xff] }
  0x1d   : > { %v214_v8 = vld [vmem:[%s2665_s28 + $0x49] sm:$0xff]  ;;  %v213_v9 = vld [vmem:[%s2665_s28 + $0x41] sm:$0xff]  ;;  %v216_v10 = vld [vmem:[%s2665_s28 + $0x59] sm:$0xff] }
  0x1e   : > { %v215_v11 = vld [vmem:[%s2665_s28 + $0x51] sm:$0xff]  ;;  %v218_v12 = vld [vmem:[%s2665_s28 + $0x69] sm:$0xff]  ;;  %v217_v13 = vld [vmem:[%s2665_s28 + $0x61] sm:$0xff] }
  0x1f   : > { %467 = vrot.lane.b32.xlu1 %v208_v2, %s2582_s29  ;;  %463 = vrot.lane.b32.xlu0 %v206_v3, %s2582_s29  ;;  %v220_v14 = vld [vmem:[%s2665_s28 + $0x79] sm:$0xff]  ;;  %v219_v15 = vld [vmem:[%s2665_s28 + $0x71] sm:$0xff] }
  0x20   : > { %v222_v16 = vld [vmem:[%s2665_s28 + $0x89] sm:$0xff]  ;;  %v221_v17 = vld [vmem:[%s2665_s28 + $0x81] sm:$0xff]  ;;  %v224_v18 = vld [vmem:[%s2665_s28 + $0x99] sm:$0xff] }
  0x21   : > { %v223_v19 = vld [vmem:[%s2665_s28 + $0x91] sm:$0xff]  ;;  %v226_v20 = vld [vmem:[%s2665_s28 + $0xa9] sm:$0xff]  ;;  %v225_v21 = vld [vmem:[%s2665_s28 + $0xa1] sm:$0xff] }
  0x22   : > { %v228_v22 = vld [vmem:[%s2665_s28 + $0xb9] sm:$0xff]  ;;  %v227_v23 = vld [vmem:[%s2665_s28 + $0xb1] sm:$0xff]  ;;  %v230_v24 = vld [vmem:[%s2665_s28 + $0xc9] sm:$0xff] }
  0x23   : > { %471 = vrot.lane.b32.xlu1 %v210_v4, %s2582_s29  ;;  %469 = vrot.lane.b32.xlu0 %v209_v5, %s2582_s29  ;;  %v229_v25 = vld [vmem:[%s2665_s28 + $0xc1] sm:$0xff]  ;;  %v232_v26 = vld [vmem:[%s2665_s28 + $0xd9] sm:$0xff] }
  0x24   : > { %v231_v27 = vld [vmem:[%s2665_s28 + $0xd1] sm:$0xff]  ;;  %v234_v28 = vld [vmem:[%s2665_s28 + $0xe9] sm:$0xff]  ;;  %v233_v29 = vld [vmem:[%s2665_s28 + $0xe1] sm:$0xff] }
  0x25   : > { %v236_v30 = vld [vmem:[%s2665_s28 + $0xf9] sm:$0xff]  ;;  %v235_v31 = vld [vmem:[%s2665_s28 + $0xf1] sm:$0xff]  ;;  %v238_v32 = vld [vmem:[%s2665_s28 + $0x109] sm:$0xff] }
  0x26   : > { %v237_v33 = vld [vmem:[%s2665_s28 + $0x101] sm:$0xff]  ;;  %v240_v34 = vld [vmem:[%s2665_s28 + $0x119] sm:$0xff]  ;;  %v239_v35 = vld [vmem:[%s2665_s28 + $0x111] sm:$0xff] }
  0x27   : > { %475 = vrot.lane.b32.xlu1 %v212_v6, %s2582_s29  ;;  %473 = vrot.lane.b32.xlu0 %v211_v7, %s2582_s29  ;;  %v242_v36 = vld [vmem:[%s2665_s28 + $0xa] sm:$0xff]  ;;  %v241_v37 = vld [vmem:[%s2665_s28 + $0x2] sm:$0xff] }
  0x28   : > { %v2744_v38 = vld [vmem:[%s2665_s28 + $0x1a] sm:$0xff]  ;;  %v2747_v39 = vld [vmem:[%s2665_s28 + $0x12] sm:$0xff]  ;;  %v2754_v40 = vld [vmem:[%s2665_s28 + $0x2a] sm:$0xff] }
  0x29   : > { %v2757_v41 = vld [vmem:[%s2665_s28 + $0x22] sm:$0xff]  ;;  %v2764_v42 = vld [vmem:[%s2665_s28 + $0x3a] sm:$0xff]  ;;  %v2767_v43 = vld [vmem:[%s2665_s28 + $0x32] sm:$0xff] }
  0x2a   : > { %v2774_v44 = vld [vmem:[%s2665_s28 + $0x4a] sm:$0xff]  ;;  %v2777_v45 = vld [vmem:[%s2665_s28 + $0x42] sm:$0xff]  ;;  %v2784_v46 = vld [vmem:[%s2665_s28 + $0x5a] sm:$0xff] }
  0x2b   : > { %479 = vrot.lane.b32.xlu1 %v214_v8, %s2582_s29  ;;  %477 = vrot.lane.b32.xlu0 %v213_v9, %s2582_s29  ;;  %v2787_v47 = vld [vmem:[%s2665_s28 + $0x52] sm:$0xff]  ;;  %v2794_v48 = vld [vmem:[%s2665_s28 + $0x6a] sm:$0xff] }
  0x2c   : > { %v2797_v49 = vld [vmem:[%s2665_s28 + $0x62] sm:$0xff]  ;;  %v2804_v50 = vld [vmem:[%s2665_s28 + $0x7a] sm:$0xff]  ;;  %v2807_v51 = vld [vmem:[%s2665_s28 + $0x72] sm:$0xff] }
  0x2d   : > { %v2814_v52 = vld [vmem:[%s2665_s28 + $0x8a] sm:$0xff]  ;;  %v2817_v53 = vld [vmem:[%s2665_s28 + $0x82] sm:$0xff]  ;;  %v2824_v54 = vld [vmem:[%s2665_s28 + $0x9a] sm:$0xff] }
  0x2e   : > { %v2827_v55 = vld [vmem:[%s2665_s28 + $0x92] sm:$0xff]  ;;  %v2834_v56 = vld [vmem:[%s2665_s28 + $0xaa] sm:$0xff]  ;;  %v2837_v57 = vld [vmem:[%s2665_s28 + $0xa2] sm:$0xff] }
  0x2f   : > { %483 = vrot.lane.b32.xlu1 %v216_v10, %s2582_s29  ;;  %481 = vrot.lane.b32.xlu0 %v215_v11, %s2582_s29  ;;  %v2844_v58 = vld [vmem:[%s2665_s28 + $0xba] sm:$0xff]  ;;  %v2847_v59 = vld [vmem:[%s2665_s28 + $0xb2] sm:$0xff] }
  0x30   : > { %v2858_v62 = vld [vmem:[%s2665_s28 + $0xca] sm:$0xff]  ;;  %v2861_v63 = vld [vmem:[%s2665_s28 + $0xc2] sm:$0xff]  ;;  %v2872_v2 = vld [vmem:[%s2665_s28 + $0xda] sm:$0xff] }
  0x31   : > { %v2875_v3 = vld [vmem:[%s2665_s28 + $0xd2] sm:$0xff]  ;;  %v2886_v6 = vld [vmem:[%s2665_s28 + $0xea] sm:$0xff]  ;;  %v2889_v7 = vld [vmem:[%s2665_s28 + $0xe2] sm:$0xff] }
  0x32   : > { %v2900_v10 = vld [vmem:[%s2665_s28 + $0xfa] sm:$0xff]  ;;  %v2903_v11 = vld [vmem:[%s2665_s28 + $0xf2] sm:$0xff] }
  0x33   : > { %487 = vrot.lane.b32.xlu1 %v218_v12, %s2582_s29  ;;  %485 = vrot.lane.b32.xlu0 %v217_v13, %s2582_s29 }
  0x37   : > { %491 = vrot.lane.b32.xlu1 %v220_v14, %s2582_s29  ;;  %489 = vrot.lane.b32.xlu0 %v219_v15, %s2582_s29  ;;  %v2914_v14 = vld [vmem:[%s2665_s28 + $0x10a] sm:$0xff]  ;;  %v2917_v15 = vld [vmem:[%s2665_s28 + $0x102] sm:$0xff] }
  0x3b   : > { %495 = vrot.lane.b32.xlu1 %v222_v16, %s2582_s29  ;;  %493 = vrot.lane.b32.xlu0 %v221_v17, %s2582_s29 }
  0x3f   : > { %499 = vrot.lane.b32.xlu1 %v224_v18, %s2582_s29  ;;  %497 = vrot.lane.b32.xlu0 %v223_v19, %s2582_s29  ;;  %v2928_v18 = vld [vmem:[%s2665_s28 + $0x11a] sm:$0xff]  ;;  %v2931_v19 = vld [vmem:[%s2665_s28 + $0x112] sm:$0xff] }
  0x43   : > { %503 = vrot.lane.b32.xlu1 %v226_v20, %s2582_s29  ;;  %501 = vrot.lane.b32.xlu0 %v225_v21, %s2582_s29 }
  0x47   : > { %507 = vrot.lane.b32.xlu1 %v228_v22, %s2582_s29  ;;  %505 = vrot.lane.b32.xlu0 %v227_v23, %s2582_s29 }
  0x4b   : > { %511 = vrot.lane.b32.xlu1 %v230_v24, %s2582_s29  ;;  %509 = vrot.lane.b32.xlu0 %v229_v25, %s2582_s29 }
  0x4f   : > { %515 = vrot.lane.b32.xlu1 %v232_v26, %s2582_s29  ;;  %513 = vrot.lane.b32.xlu0 %v231_v27, %s2582_s29 }
  0x53   : > { %519 = vrot.lane.b32.xlu1 %v234_v28, %s2582_s29  ;;  %517 = vrot.lane.b32.xlu0 %v233_v29, %s2582_s29 }
  0x57   : > { %523 = vrot.lane.b32.xlu1 %v236_v30, %s2582_s29  ;;  %521 = vrot.lane.b32.xlu0 %v235_v31, %s2582_s29 }
  0x5b   : > { %527 = vrot.lane.b32.xlu1 %v238_v32, %s2582_s29  ;;  %525 = vrot.lane.b32.xlu0 %v237_v33, %s2582_s29 }
  0x5f   : > { %531 = vrot.lane.b32.xlu1 %v240_v34, %s2582_s29  ;;  %529 = vrot.lane.b32.xlu0 %v239_v35, %s2582_s29 }
  0x63   : > { %607 = vrot.lane.b32.xlu1 %v242_v36, %s2583_s30  ;;  %605 = vrot.lane.b32.xlu0 %v241_v37, %s2583_s30 }
  0x67   : > { %611 = vrot.lane.b32.xlu1 %v2744_v38, %s2583_s30  ;;  %609 = vrot.lane.b32.xlu0 %v2747_v39, %s2583_s30 }
  0x6b   : > { %615 = vrot.lane.b32.xlu1 %v2754_v40, %s2583_s30  ;;  %613 = vrot.lane.b32.xlu0 %v2757_v41, %s2583_s30 }
  0x6f   : > { %619 = vrot.lane.b32.xlu1 %v2764_v42, %s2583_s30  ;;  %617 = vrot.lane.b32.xlu0 %v2767_v43, %s2583_s30 }
  0x73   : > { %623 = vrot.lane.b32.xlu1 %v2774_v44, %s2583_s30  ;;  %621 = vrot.lane.b32.xlu0 %v2777_v45, %s2583_s30 }
  0x77   : > { %627 = vrot.lane.b32.xlu1 %v2784_v46, %s2583_s30  ;;  %625 = vrot.lane.b32.xlu0 %v2787_v47, %s2583_s30 }
  0x7b   : > { %631 = vrot.lane.b32.xlu1 %v2794_v48, %s2583_s30  ;;  %629 = vrot.lane.b32.xlu0 %v2797_v49, %s2583_s30 }
  0x7f   : > { %635 = vrot.lane.b32.xlu1 %v2804_v50, %s2583_s30  ;;  %633 = vrot.lane.b32.xlu0 %v2807_v51, %s2583_s30 }
  0x83   : > { %639 = vrot.lane.b32.xlu1 %v2814_v52, %s2583_s30  ;;  %637 = vrot.lane.b32.xlu0 %v2817_v53, %s2583_s30 }
  0x87   : > { %643 = vrot.lane.b32.xlu1 %v2824_v54, %s2583_s30  ;;  %641 = vrot.lane.b32.xlu0 %v2827_v55, %s2583_s30 }
  0x8b   : > { %647 = vrot.lane.b32.xlu1 %v2834_v56, %s2583_s30  ;;  %645 = vrot.lane.b32.xlu0 %v2837_v57, %s2583_s30 }
  0x8d   : > { %v2849_v60 = vpop.permute.xlu1 %465  ;;  %v2851_v61 = vpop.permute.xlu0 %461 }
  0x8f   : > { %651 = vrot.lane.b32.xlu1 %v2844_v58, %s2583_s30  ;;  %649 = vrot.lane.b32.xlu0 %v2847_v59, %s2583_s30 }
  0x91   : > { %v2863_v0 = vpop.permute.xlu1 %467  ;;  %v2865_v1 = vpop.permute.xlu0 %463 }
  0x93   : > { %655 = vrot.lane.b32.xlu1 %v2858_v62, %s2583_s30  ;;  %653 = vrot.lane.b32.xlu0 %v2861_v63, %s2583_s30 }
  0x95   : > { %v2877_v4 = vpop.permute.xlu1 %471  ;;  %v2879_v5 = vpop.permute.xlu0 %469 }
  0x97   : > { %659 = vrot.lane.b32.xlu1 %v2872_v2, %s2583_s30  ;;  %657 = vrot.lane.b32.xlu0 %v2875_v3, %s2583_s30 }
  0x99   : > { %v2891_v8 = vpop.permute.xlu1 %475  ;;  %v2893_v9 = vpop.permute.xlu0 %473 }
  0x9a   : > { %4388 = vst [vmem:[#allocation5_spill] sm:$0xff] %v2891_v8  ;;  %4389 = vst [vmem:[#allocation6_spill] sm:$0xff] %v2893_v9 }
  0x9b   : > { %663 = vrot.lane.b32.xlu1 %v2886_v6, %s2583_s30  ;;  %661 = vrot.lane.b32.xlu0 %v2889_v7, %s2583_s30 }
  0x9d   : > { %v2905_v12 = vpop.permute.xlu1 %479  ;;  %v2907_v13 = vpop.permute.xlu0 %477 }
  0x9e   : > { %4390 = vst [vmem:[#allocation7_spill] sm:$0xff] %v2905_v12  ;;  %4391 = vst [vmem:[#allocation8_spill] sm:$0xff] %v2907_v13 }
  0x9f   : > { %667 = vrot.lane.b32.xlu1 %v2900_v10, %s2583_s30  ;;  %665 = vrot.lane.b32.xlu0 %v2903_v11, %s2583_s30 }
  0xa1   : > { %v2919_v16 = vpop.permute.xlu1 %483  ;;  %v2921_v17 = vpop.permute.xlu0 %481 }
  0xa2   : > { %4392 = vst [vmem:[#allocation9_spill] sm:$0xff] %v2919_v16  ;;  %4393 = vst [vmem:[#allocation10_spill] sm:$0xff] %v2921_v17  ;;  %v372_v17 = vld [vmem:[%s2665_s28 + $0xbd] sm:$0xff] }
  0xa3   : > { %671 = vrot.lane.b32.xlu1 %v2914_v14, %s2583_s30  ;;  %669 = vrot.lane.b32.xlu0 %v2917_v15, %s2583_s30 }
  0xa5   : > { %v2933_v20 = vpop.permute.xlu1 %487  ;;  %v2935_v21 = vpop.permute.xlu0 %485 }
  0xa6   : > { %4394 = vst [vmem:[#allocation11_spill] sm:$0xff] %v2933_v20  ;;  %4395 = vst [vmem:[#allocation12_spill] sm:$0xff] %v2935_v21  ;;  %v307_v20 = vld [vmem:[%s2665_s28 + $0xf3] sm:$0xff] }
  0xa7   : > { %675 = vrot.lane.b32.xlu1 %v2928_v18, %s2583_s30  ;;  %673 = vrot.lane.b32.xlu0 %v2931_v19, %s2583_s30 }
  0xa9   : > { %v2941_v22 = vpop.permute.xlu1 %491  ;;  %v2943_v23 = vpop.permute.xlu0 %489 }
  0xaa   : > { %4396 = vst [vmem:[#allocation13_spill] sm:$0xff] %v2941_v22  ;;  %4397 = vst [vmem:[#allocation14_spill] sm:$0xff] %v2943_v23  ;;  %v299_v23 = vld [vmem:[%s2665_s28 + $0xb3] sm:$0xff] }
  0xab   : > { %717 = vrot.lane.b32.xlu1 %v2744_v38, %s2584_s4  ;;  %715 = vrot.lane.b32.xlu0 %v2747_v39, %s2584_s4 }
  0xad   : > { %v2949_v24 = vpop.permute.xlu1 %495  ;;  %v2951_v25 = vpop.permute.xlu0 %493 }
  0xae   : > { %4398 = vst [vmem:[#allocation15_spill] sm:$0xff] %v2949_v24  ;;  %4399 = vst [vmem:[#allocation16_spill] sm:$0xff] %v2951_v25  ;;  %v293_v25 = vld [vmem:[%s2665_s28 + $0x83] sm:$0xff] }
  0xaf   : > { %721 = vrot.lane.b32.xlu1 %v2754_v40, %s2584_s4  ;;  %719 = vrot.lane.b32.xlu0 %v2757_v41, %s2584_s4 }
  0xb1   : > { %v2957_v26 = vpop.permute.xlu1 %499  ;;  %v2959_v27 = vpop.permute.xlu0 %497 }
  0xb3   : > { %725 = vrot.lane.b32.xlu1 %v2764_v42, %s2584_s4  ;;  %723 = vrot.lane.b32.xlu0 %v2767_v43, %s2584_s4 }
  0xb5   : > { %v2965_v28 = vpop.permute.xlu1 %503  ;;  %v2967_v29 = vpop.permute.xlu0 %501 }
  0xb7   : > { %729 = vrot.lane.b32.xlu1 %v2774_v44, %s2584_s4  ;;  %727 = vrot.lane.b32.xlu0 %v2777_v45, %s2584_s4 }
  0xb9   : > { %v2973_v30 = vpop.permute.xlu1 %507  ;;  %v2975_v31 = vpop.permute.xlu0 %505 }
  0xbb   : > { %733 = vrot.lane.b32.xlu1 %v2784_v46, %s2584_s4  ;;  %731 = vrot.lane.b32.xlu0 %v2787_v47, %s2584_s4 }
  0xbd   : > { %v2981_v32 = vpop.permute.xlu1 %511  ;;  %v2983_v33 = vpop.permute.xlu0 %509 }
  0xbe   : > { %4400 = vst [vmem:[#allocation17_spill] sm:$0xff] %v2981_v32  ;;  %4401 = vst [vmem:[#allocation18_spill] sm:$0xff] %v2983_v33 }
  0xbf   : > { %737 = vrot.lane.b32.xlu1 %v2794_v48, %s2584_s4  ;;  %735 = vrot.lane.b32.xlu0 %v2797_v49, %s2584_s4 }
  0xc1   : > { %v2989_v34 = vpop.permute.xlu1 %515  ;;  %v2991_v35 = vpop.permute.xlu0 %513 }
  0xc2   : > { %4402 = vst [vmem:[#allocation19_spill] sm:$0xff] %v2989_v34  ;;  %4403 = vst [vmem:[#allocation20_spill] sm:$0xff] %v2991_v35 }
  0xc3   : > { %741 = vrot.lane.b32.xlu1 %v2804_v50, %s2584_s4  ;;  %739 = vrot.lane.b32.xlu0 %v2807_v51, %s2584_s4 }
  0xc5   : > { %v2997_v36 = vpop.permute.xlu1 %519  ;;  %v2999_v37 = vpop.permute.xlu0 %517 }
  0xc6   : > { %4404 = vst [vmem:[#allocation21_spill] sm:$0xff] %v2997_v36  ;;  %4405 = vst [vmem:[#allocation22_spill] sm:$0xff] %v2999_v37 }
  0xc7   : > { %745 = vrot.lane.b32.xlu1 %v2814_v52, %s2584_s4  ;;  %743 = vrot.lane.b32.xlu0 %v2817_v53, %s2584_s4 }
  0xc9   : > { %v3005_v38 = vpop.permute.xlu1 %523  ;;  %v3007_v39 = vpop.permute.xlu0 %521 }
  0xca   : > { %4406 = vst [vmem:[#allocation23_spill] sm:$0xff] %v3005_v38  ;;  %4407 = vst [vmem:[#allocation24_spill] sm:$0xff] %v3007_v39 }
  0xcb   : > { %749 = vrot.lane.b32.xlu1 %v2824_v54, %s2584_s4  ;;  %747 = vrot.lane.b32.xlu0 %v2827_v55, %s2584_s4 }
  0xcd   : > { %v3013_v40 = vpop.permute.xlu1 %527  ;;  %v3015_v41 = vpop.permute.xlu0 %525 }
  0xce   : > { %4408 = vst [vmem:[#allocation25_spill] sm:$0xff] %v3013_v40  ;;  %4409 = vst [vmem:[#allocation26_spill] sm:$0xff] %v3015_v41  ;;  %v295_v40 = vld [vmem:[%s2665_s28 + $0x93] sm:$0xff]  ;;  %v297_v41 = vld [vmem:[%s2665_s28 + $0xa3] sm:$0xff] }
  0xcf   : > { %753 = vrot.lane.b32.xlu1 %v2834_v56, %s2584_s4  ;;  %751 = vrot.lane.b32.xlu0 %v2837_v57, %s2584_s4  ;;  %v278_v56 = vld [vmem:[%s2665_s28 + $0x12a] sm:$0xff]  ;;  %v277_v57 = vld [vmem:[%s2665_s28 + $0x122] sm:$0xff] }
  0xd1   : > { %v3021_v42 = vpop.permute.xlu1 %531  ;;  %v3023_v43 = vpop.permute.xlu0 %529 }
  0xd2   : > { %4410 = vst [vmem:[#allocation27_spill] sm:$0xff] %v3021_v42  ;;  %4411 = vst [vmem:[#allocation28_spill] sm:$0xff] %v3023_v43  ;;  %v289_v42 = vld [vmem:[%s2665_s28 + $0x63] sm:$0xff] }
  0xd3   : > { %757 = vrot.lane.b32.xlu1 %v2844_v58, %s2584_s4  ;;  %755 = vrot.lane.b32.xlu0 %v2847_v59, %s2584_s4 }
  0xd5   : > { %v3029_v44 = vpop.permute.xlu1 %607  ;;  %v3031_v45 = vpop.permute.xlu0 %605 }
  0xd7   : > { %761 = vrot.lane.b32.xlu1 %v2858_v62, %s2584_s4  ;;  %759 = vrot.lane.b32.xlu0 %v2861_v63, %s2584_s4  ;;  %v280_v62 = vld [vmem:[%s2665_s28 + $0x1b] sm:$0xff]  ;;  %v279_v63 = vld [vmem:[%s2665_s28 + $0x13] sm:$0xff] }
  0xd9   : > { %v3037_v46 = vpop.permute.xlu1 %611  ;;  %v3039_v47 = vpop.permute.xlu0 %609 }
  0xdb   : > { %765 = vrot.lane.b32.xlu1 %v2872_v2, %s2584_s4  ;;  %763 = vrot.lane.b32.xlu0 %v2875_v3, %s2584_s4 }
  0xdd   : > { %v3045_v48 = vpop.permute.xlu1 %615  ;;  %v3047_v49 = vpop.permute.xlu0 %613 }
  0xdf   : > { %769 = vrot.lane.b32.xlu1 %v2886_v6, %s2584_s4  ;;  %767 = vrot.lane.b32.xlu0 %v2889_v7, %s2584_s4  ;;  %v282_v6 = vld [vmem:[%s2665_s28 + $0x2b] sm:$0xff]  ;;  %v281_v7 = vld [vmem:[%s2665_s28 + $0x23] sm:$0xff] }
  0xe1   : > { %v3053_v50 = vpop.permute.xlu1 %619  ;;  %v3055_v51 = vpop.permute.xlu0 %617 }
  0xe2   : > { %4412 = vst [vmem:[#allocation29_spill] sm:$0xff] %v3053_v50  ;;  %4413 = vst [vmem:[#allocation30_spill] sm:$0xff] %v3055_v51  ;;  %v411_v50 = vld [vmem:[%s2665_s28 + $0xd6] sm:$0xff] }
  0xe3   : > { %773 = vrot.lane.b32.xlu1 %v2900_v10, %s2584_s4  ;;  %771 = vrot.lane.b32.xlu0 %v2903_v11, %s2584_s4  ;;  %v395_v51 = vld [vmem:[%s2665_s28 + $0x56] sm:$0xff] }
  0xe5   : > { %v3061_v52 = vpop.permute.xlu1 %623  ;;  %v3063_v53 = vpop.permute.xlu0 %621 }
  0xe6   : > { %4414 = vst [vmem:[#allocation31_spill] sm:$0xff] %v3061_v52  ;;  %4415 = vst [vmem:[#allocation32_spill] sm:$0xff] %v3063_v53  ;;  %v1806_v52 = vld [vmem:[%s4383_s1 + $0x8] sm:$0xff]  ;;  %v391_v53 = vld [vmem:[%s2665_s28 + $0x36] sm:$0xff] }
  0xe7   : > { %777 = vrot.lane.b32.xlu1 %v2914_v14, %s2584_s4  ;;  %775 = vrot.lane.b32.xlu0 %v2917_v15, %s2584_s4  ;;  %v284_v14 = vld [vmem:[%s2665_s28 + $0x3b] sm:$0xff]  ;;  %v283_v15 = vld [vmem:[%s2665_s28 + $0x33] sm:$0xff] }
  0xe9   : > { %v3069_v54 = vpop.permute.xlu1 %627  ;;  %v3071_v55 = vpop.permute.xlu0 %625 }
  0xea   : > { %4416 = vst [vmem:[#allocation33_spill] sm:$0xff] %v3069_v54  ;;  %4417 = vst [vmem:[#allocation34_spill] sm:$0xff] %v3071_v55 }
  0xeb   : > { %781 = vrot.lane.b32.xlu1 %v2928_v18, %s2584_s4  ;;  %779 = vrot.lane.b32.xlu0 %v2931_v19, %s2584_s4 }
  0xed   : > { %v3079_v58 = vpop.permute.xlu1 %631  ;;  %v3081_v59 = vpop.permute.xlu0 %629 }
  0xee   : > { %4418 = vst [vmem:[#allocation35_spill] sm:$0xff] %v3079_v58  ;;  %4419 = vst [vmem:[#allocation36_spill] sm:$0xff] %v3081_v59  ;;  %v305_v58 = vld [vmem:[%s2665_s28 + $0xe3] sm:$0xff] }
  0xef   : > { %785 = vrot.lane.b32.xlu1 %v278_v56, %s2584_s4  ;;  %783 = vrot.lane.b32.xlu0 %v277_v57, %s2584_s4  ;;  %v286_v56 = vld [vmem:[%s2665_s28 + $0x4b] sm:$0xff]  ;;  %v285_v57 = vld [vmem:[%s2665_s28 + $0x43] sm:$0xff] }
  0xf0   : > { %v309_v59 = vld [vmem:[%s2665_s28 + $0x103] sm:$0xff] }
  0xf1   : > { %v3087_v2 = vpop.permute.xlu1 %635  ;;  %v3089_v3 = vpop.permute.xlu0 %633 }
  0xf2   : > { %4420 = vst [vmem:[#allocation37_spill] sm:$0xff] %v3087_v2  ;;  %4421 = vst [vmem:[#allocation38_spill] sm:$0xff] %v3089_v3 }
  0xf3   : > { %861 = vrot.lane.b32.xlu1 %v280_v62, %s2585_s5  ;;  %859 = vrot.lane.b32.xlu0 %v279_v63, %s2585_s5 }
  0xf5   : > { %v3095_v10 = vpop.permute.xlu1 %639  ;;  %v3097_v11 = vpop.permute.xlu0 %637 }
  0xf6   : > { %4422 = vst [vmem:[#allocation39_spill] sm:$0xff] %v3095_v10  ;;  %4423 = vst [vmem:[#allocation40_spill] sm:$0xff] %v3097_v11  ;;  %v291_v11 = vld [vmem:[%s2665_s28 + $0x73] sm:$0xff] }
  0xf7   : > { %865 = vrot.lane.b32.xlu1 %v282_v6, %s2585_s5  ;;  %863 = vrot.lane.b32.xlu0 %v281_v7, %s2585_s5  ;;  %v288_v6 = vld [vmem:[%s2665_s28 + $0x5b] sm:$0xff]  ;;  %v287_v7 = vld [vmem:[%s2665_s28 + $0x53] sm:$0xff] }
  0xf9   : > { %v3103_v18 = vpop.permute.xlu1 %643  ;;  %v3105_v19 = vpop.permute.xlu0 %641 }
  0xfb   : > { %869 = vrot.lane.b32.xlu1 %v284_v14, %s2585_s5  ;;  %867 = vrot.lane.b32.xlu0 %v283_v15, %s2585_s5  ;;  %v290_v15 = vld [vmem:[%s2665_s28 + $0x6b] sm:$0xff] }
  0xfd   : > { %v3111_v62 = vpop.permute.xlu1 %647  ;;  %v3113_v63 = vpop.permute.xlu0 %645 }
  0xff   : > { %873 = vrot.lane.b32.xlu1 %v286_v56, %s2585_s5  ;;  %871 = vrot.lane.b32.xlu0 %v285_v57, %s2585_s5  ;;  %v292_v57 = vld [vmem:[%s2665_s28 + $0x7b] sm:$0xff] }
 0x101   : > { %v3119_v10 = vpop.permute.xlu1 %651  ;;  %v3121_v14 = vpop.permute.xlu0 %649 }
 0x103   : > { %877 = vrot.lane.b32.xlu1 %v288_v6, %s2585_s5  ;;  %875 = vrot.lane.b32.xlu0 %v287_v7, %s2585_s5  ;;  %v294_v7 = vld [vmem:[%s2665_s28 + $0x8b] sm:$0xff] }
 0x105   : > { %v3127_v24 = vpop.permute.xlu1 %655  ;;  %v3129_v56 = vpop.permute.xlu0 %653 }
 0x106   : > { %4424 = vst [vmem:[#allocation41_spill] sm:$0xff] %v3127_v24  ;;  %4425 = vst [vmem:[#allocation42_spill] sm:$0xff] %v3129_v56  ;;  %v413_v56 = vld [vmem:[%s2665_s28 + $0xe6] sm:$0xff] }
 0x107   : > { %881 = vrot.lane.b32.xlu1 %v290_v15, %s2585_s5  ;;  %879 = vrot.lane.b32.xlu0 %v289_v42, %s2585_s5  ;;  %v296_v42 = vld [vmem:[%s2665_s28 + $0x9b] sm:$0xff] }
 0x109   : > { %v3135_v43 = vpop.permute.xlu1 %659  ;;  %v3137_v6 = vpop.permute.xlu0 %657 }
 0x10a   : > { %4426 = vst [vmem:[#allocation43_spill] sm:$0xff] %v3135_v43  ;;  %4427 = vst [vmem:[#allocation44_spill] sm:$0xff] %v3137_v6  ;;  %v409_v6 = vld [vmem:[%s2665_s28 + $0xc6] sm:$0xff] }
 0x10b   : > { %885 = vrot.lane.b32.xlu1 %v292_v57, %s2585_s5  ;;  %883 = vrot.lane.b32.xlu0 %v291_v11, %s2585_s5  ;;  %v298_v11 = vld [vmem:[%s2665_s28 + $0xab] sm:$0xff] }
 0x10d   : > { %v3143_v2 = vpop.permute.xlu1 %663  ;;  %v3145_v15 = vpop.permute.xlu0 %661 }
 0x10e   : > { %4428 = vst [vmem:[#allocation45_spill] sm:$0xff] %v3143_v2  ;;  %4429 = vst [vmem:[#allocation46_spill] sm:$0xff] %v3145_v15  ;;  %v353_v15 = vld [vmem:[%s2665_s28 + $0x25] sm:$0xff] }
 0x10f   : > { %889 = vrot.lane.b32.xlu1 %v294_v7, %s2585_s5  ;;  %887 = vrot.lane.b32.xlu0 %v293_v25, %s2585_s5  ;;  %v300_v25 = vld [vmem:[%s2665_s28 + $0xbb] sm:$0xff] }
 0x111   : > { %v3151_v22 = vpop.permute.xlu1 %667  ;;  %v3153_v57 = vpop.permute.xlu0 %665 }
 0x112   : > { %4430 = vst [vmem:[#allocation47_spill] sm:$0xff] %v3151_v22  ;;  %4431 = vst [vmem:[#allocation48_spill] sm:$0xff] %v3153_v57 }
 0x113   : > { %893 = vrot.lane.b32.xlu1 %v296_v42, %s2585_s5  ;;  %891 = vrot.lane.b32.xlu0 %v295_v40, %s2585_s5  ;;  %v302_v40 = vld [vmem:[%s2665_s28 + $0xcb] sm:$0xff] }
 0x115   : > { %v3159_v3 = vpop.permute.xlu1 %671  ;;  %v3161_v7 = vpop.permute.xlu0 %669 }
 0x116   : > { %4432 = vst [vmem:[#allocation49_spill] sm:$0xff] %v3159_v3  ;;  %4433 = vst [vmem:[#allocation50_spill] sm:$0xff] %v3161_v7  ;;  %v301_v3 = vld [vmem:[%s2665_s28 + $0xc3] sm:$0xff] }
 0x117   : > { %897 = vrot.lane.b32.xlu1 %v298_v11, %s2585_s5  ;;  %895 = vrot.lane.b32.xlu0 %v297_v41, %s2585_s5  ;;  %v304_v41 = vld [vmem:[%s2665_s28 + $0xdb] sm:$0xff] }
 0x119   : > { %v3167_v22 = vpop.permute.xlu1 %675  ;;  %v3169_v42 = vpop.permute.xlu0 %673 }
 0x11a   : > { %4434 = vst [vmem:[#allocation51_spill] sm:$0xff] %v3167_v22  ;;  %4435 = vst [vmem:[#allocation52_spill] sm:$0xff] %v3169_v42  ;;  %v303_v22 = vld [vmem:[%s2665_s28 + $0xd3] sm:$0xff] }
 0x11b   : > { %901 = vrot.lane.b32.xlu1 %v300_v25, %s2585_s5  ;;  %899 = vrot.lane.b32.xlu0 %v299_v23, %s2585_s5  ;;  %v306_v23 = vld [vmem:[%s2665_s28 + $0xeb] sm:$0xff] }
 0x11d   : > { %v3175_v7 = vpop.permute.xlu1 %717  ;;  %v3177_v11 = vpop.permute.xlu0 %715 }
 0x11f   : > { %905 = vrot.lane.b32.xlu1 %v302_v40, %s2585_s5  ;;  %903 = vrot.lane.b32.xlu0 %v301_v3, %s2585_s5  ;;  %v308_v3 = vld [vmem:[%s2665_s28 + $0xfb] sm:$0xff] }
 0x121   : > { %v3183_v42 = vpop.permute.xlu1 %721  ;;  %v3185_v25 = vpop.permute.xlu0 %719 }
 0x123   : > { %909 = vrot.lane.b32.xlu1 %v304_v41, %s2585_s5  ;;  %907 = vrot.lane.b32.xlu0 %v303_v22, %s2585_s5  ;;  %v310_v22 = vld [vmem:[%s2665_s28 + $0x10b] sm:$0xff] }
 0x125   : > { %v3191_v38 = vpop.permute.xlu1 %725  ;;  %v3193_v40 = vpop.permute.xlu0 %723 }
 0x127   : > { %913 = vrot.lane.b32.xlu1 %v306_v23, %s2585_s5  ;;  %911 = vrot.lane.b32.xlu0 %v305_v58, %s2585_s5  ;;  %v312_v58 = vld [vmem:[%s2665_s28 + $0x11b] sm:$0xff]  ;;  %v311_v23 = vld [vmem:[%s2665_s28 + $0x113] sm:$0xff] }
 0x129   : > { %v3199_v57 = vpop.permute.xlu1 %729  ;;  %v3201_v41 = vpop.permute.xlu0 %727 }
 0x12a   : > { %4436 = vst [vmem:[#allocation53_spill] sm:$0xff] %v3199_v57  ;;  %4437 = vst [vmem:[#allocation54_spill] sm:$0xff] %v3201_v41 }
 0x12b   : > { %917 = vrot.lane.b32.xlu1 %v308_v3, %s2585_s5  ;;  %915 = vrot.lane.b32.xlu0 %v307_v20, %s2585_s5  ;;  %v333_v20 = vld [vmem:[%s2665_s28 + $0xa4] sm:$0xff]  ;;  %v315_v3 = vld [vmem:[%s2665_s28 + $0x14] sm:$0xff] }
 0x12d   : > { %v3207_v39 = vpop.permute.xlu1 %733  ;;  %v3209_v21 = vpop.permute.xlu0 %731 }
 0x12e   : > { %4438 = vst [vmem:[#allocation55_spill] sm:$0xff] %v3207_v39  ;;  %4439 = vst [vmem:[#allocation56_spill] sm:$0xff] %v3209_v21  ;;  %v354_v39 = vld [vmem:[%s2665_s28 + $0x2d] sm:$0xff] }
 0x12f   : > { %921 = vrot.lane.b32.xlu1 %v310_v22, %s2585_s5  ;;  %919 = vrot.lane.b32.xlu0 %v309_v59, %s2585_s5  ;;  %v1813_v59 = vld [vmem:[%s4383_s1 + $0x40] sm:$0xff]  ;;  %v334_v22 = vld [vmem:[%s2665_s28 + $0xac] sm:$0xff] }
 0x130   : > { %2377 = vmatprep.subr.mxu0 %v1813_v59  ;;  %2449 = vmatprep.subr.mxu1 %v1813_v59 }
 0x131   : > { %v3215_v2 = vpop.permute.xlu1 %737  ;;  %v3217_v54 = vpop.permute.xlu0 %735  ;;  %2378 = vmatpush3.msra.mxu0 %v1813_v59  ;;  %2458 = vmatpush3.msra.mxu1 %v1813_v59 }
 0x132   : > { %4440 = vst [vmem:[#allocation57_spill] sm:$0xff] %v3215_v2  ;;  %4441 = vst [vmem:[#allocation58_spill] sm:$0xff] %v3217_v54  ;;  %v1809_v2 = vld [vmem:[%s4383_s1 + $0x20] sm:$0xff]  ;;  %v371_v54 = vld [vmem:[%s2665_s28 + $0xb5] sm:$0xff] }
 0x133   : > { %925 = vrot.lane.b32.xlu1 %v312_v58, %s2585_s5  ;;  %923 = vrot.lane.b32.xlu0 %v311_v23, %s2585_s5  ;;  %v316_v58 = vld [vmem:[%s2665_s28 + $0x1c] sm:$0xff] }
 0x135   : > { %v3223_v36 = vpop.permute.xlu1 %741  ;;  %v3225_v16 = vpop.permute.xlu0 %739 }
 0x136   : > { %4442 = vst [vmem:[#allocation59_spill] sm:$0xff] %v3223_v36  ;;  %4443 = vst [vmem:[#allocation60_spill] sm:$0xff] %v3225_v16  ;;  %v3247_v16 = vld [vmem:[%s2665_s28 + $0xb4] sm:$0xff] }
 0x137   : > { %1039 = vrot.lane.b32.xlu1 %v333_v20, %s2586_s6  ;;  %1003 = vrot.lane.b32.xlu0 %v315_v3, %s2586_s6  ;;  %v1812_v20 = vld [vmem:[%s4383_s1 + $0x38] sm:$0xff]  ;;  %v1811_v3 = vld [vmem:[%s4383_s1 + $0x30] sm:$0xff] }
 0x138   : > { %2379 = vmatprep.subr.mxu0 %v1812_v20  ;;  %2450 = vmatprep.subr.mxu1 %v1812_v20 }
 0x139   : > { %v3234_v23 = vpop.permute.xlu1 %745  ;;  %v3236_v36 = vpop.permute.xlu0 %743  ;;  %2380 = vmatpush3.msra.mxu0 %v1812_v20  ;;  %2459 = vmatpush3.msra.mxu1 %v1812_v20 }
 0x13a   : > { %4444 = vst [vmem:[#allocation61_spill] sm:$0xff] %v3234_v23  ;;  %4445 = vst [vmem:[#allocation62_spill] sm:$0xff] %v3236_v36  ;;  %v3250_v23 = vld [vmem:[%s2665_s28 + $0x24] sm:$0xff]  ;;  %2381 = vmatprep.subr.mxu0 %v1811_v3  ;;  %2451 = vmatprep.subr.mxu1 %v1811_v3 }
 0x13b   : > { %1041 = vrot.lane.b32.xlu1 %v334_v22, %s2586_s6  ;;  %1005 = vrot.lane.b32.xlu0 %v316_v58, %s2586_s6  ;;  %v1810_v22 = vld [vmem:[%s4383_s1 + $0x28] sm:$0xff]  ;;  %v3264_v58 = vld [vmem:[%s2665_s28 + $0xbc] sm:$0xff] }
 0x13c   : > { %2382 = vmatpush3.msra.mxu0 %v1811_v3  ;;  %2460 = vmatpush3.msra.mxu1 %v1811_v3  ;;  %v1808_v3 = vld [vmem:[%s4383_s1 + $0x18] sm:$0xff] }
 0x13d   : > { %v3252_v59 = vpop.permute.xlu1 %749  ;;  %v3254_v36 = vpop.permute.xlu0 %747  ;;  %2383 = vmatprep.subr.mxu0 %v1810_v22  ;;  %2452 = vmatprep.subr.mxu1 %v1810_v22 }
 0x13e   : > { %4446 = vst [vmem:[#allocation63_spill] sm:$0xff] %v3252_v59  ;;  %4447 = vst [vmem:[#allocation64_spill] sm:$0xff] %v3254_v36  ;;  %v3267_v59 = vld [vmem:[%s2665_s28 + $0x2c] sm:$0xff]  ;;  %2384 = vmatpush3.msra.mxu0 %v1810_v22  ;;  %2461 = vmatpush3.msra.mxu1 %v1810_v22 }
 0x13f   : > { %1149 = vrot.lane.b32.xlu1 %v3247_v16, %s2587_s24  ;;  %1113 = vrot.lane.b32.xlu0 %v3250_v23, %s2587_s24  ;;  %v1807_v22 = vld [vmem:[%s4383_s1 + $0x10] sm:$0xff] }
 0x140   : > { %2385 = vmatprep.subr.mxu0 %v1809_v2  ;;  %2453 = vmatprep.subr.mxu1 %v1809_v2 }
 0x141   : > { %v3269_v20 = vpop.permute.xlu1 %753  ;;  %v3271_v36 = vpop.permute.xlu0 %751  ;;  %2386 = vmatpush3.msra.mxu0 %v1809_v2  ;;  %2462 = vmatpush3.msra.mxu1 %v1809_v2 }
 0x142   : > { %2387 = vmatprep.subr.mxu0 %v1808_v3  ;;  %2454 = vmatprep.subr.mxu1 %v1808_v3 }
 0x143   : > { %1151 = vrot.lane.b32.xlu1 %v3264_v58, %s2587_s24  ;;  %1115 = vrot.lane.b32.xlu0 %v3267_v59, %s2587_s24 }
 0x144   : > { %2388 = vmatpush3.msra.mxu0 %v1808_v3  ;;  %2463 = vmatpush3.msra.mxu1 %v1808_v3  ;;  %v389_v3 = vld [vmem:[%s2665_s28 + $0x26] sm:$0xff] }
 0x145   : > { %v3285_v55 = vpop.permute.xlu1 %757  ;;  %v3287_v37 = vpop.permute.xlu0 %755  ;;  %2389 = vmatprep.subr.mxu0 %v1807_v22  ;;  %2455 = vmatprep.subr.mxu1 %v1807_v22 }
 0x146   : > { %2390 = vmatpush3.msra.mxu0 %v1807_v22  ;;  %2464 = vmatpush3.msra.mxu1 %v1807_v22  ;;  %v390_v22 = vld [vmem:[%s2665_s28 + $0x2e] sm:$0xff] }
 0x147   : > { %1293 = vrot.lane.b32.xlu1 %v371_v54, %s2588_s8  ;;  %1257 = vrot.lane.b32.xlu0 %v353_v15, %s2588_s8  ;;  %v1805_v54 = vld [vmem:[%s4383_s1] sm:$0xff]  ;;  %v407_v15 = vld [vmem:[%s2665_s28 + $0xb6] sm:$0xff] }
 0x148   : > { %2391 = vmatprep.subr.mxu0 %v1806_v52  ;;  %2456 = vmatprep.subr.mxu1 %v1806_v52 }
 0x149   : > { %v3296_v43 = vpop.permute.xlu1 %761  ;;  %v3298_v2 = vpop.permute.xlu0 %759  ;;  %2392 = vmatpush3.msra.mxu0 %v1806_v52  ;;  %2465 = vmatpush3.msra.mxu1 %v1806_v52  ;;  %v408_v52 = vld [vmem:[%s2665_s28 + $0xbe] sm:$0xff] }
 0x14a   : > { %4448 = vst [vmem:[#allocation65_spill] sm:$0xff] %v3296_v43  ;;  %2393 = vmatprep.subr.mxu0 %v1805_v54  ;;  %2457 = vmatprep.subr.mxu1 %v1805_v54  ;;  %v3519_v43 = vld [vmem:[%s2665_s28 + $0xf4] sm:$0xff] }
 0x14b   : > { %1295 = vrot.lane.b32.xlu1 %v372_v17, %s2588_s8  ;;  %1259 = vrot.lane.b32.xlu0 %v354_v39, %s2588_s8 }
 0x14c   : > { %2394 = vmatpush3.msra.mxu0 %v1805_v54  ;;  %2466 = vmatpush3.msra.mxu1 %v1805_v54 }
 0x14d   : > { %v3310_v34 = vpop.permute.xlu1 %765  ;;  %v3312_v12 = vpop.permute.xlu0 %763 }
 0x14e   : > { %4449 = vst [vmem:[#allocation66_spill] sm:$0xff] %v3310_v34  ;;  %4450 = vst [vmem:[#allocation67_spill] sm:$0xff] %v3312_v12 }
 0x14f   : > { %1437 = vrot.lane.b32.xlu1 %v407_v15, %s2589_s19  ;;  %1401 = vrot.lane.b32.xlu0 %v389_v3, %s2589_s19 }
 0x151   : > { %v3316_v17 = vpop.permute.xlu1 %769  ;;  %v3318_v39 = vpop.permute.xlu0 %767 }
 0x152   : > { %4451 = vst [vmem:[#allocation68_spill] sm:$0xff] %v3316_v17  ;;  %4452 = vst [vmem:[#allocation69_spill] sm:$0xff] %v3318_v39  ;;  %v374_v39 = vld [vmem:[%s2665_s28 + $0xcd] sm:$0xff] }
 0x153   : > { %1043 = vrot.lane.b32.xlu1 %v3247_v16, %s2586_s6  ;;  %1007 = vrot.lane.b32.xlu0 %v3250_v23, %s2586_s6  ;;  %v337_v16 = vld [vmem:[%s2665_s28 + $0xc4] sm:$0xff]  ;;  %v319_v23 = vld [vmem:[%s2665_s28 + $0x34] sm:$0xff] }
 0x155   : > { %v3326_v15 = vpop.permute.xlu1 %773  ;;  %v3328_v3 = vpop.permute.xlu0 %771 }
 0x156   : > { %4453 = vst [vmem:[#allocation70_spill] sm:$0xff] %v3326_v15  ;;  %4454 = vst [vmem:[#allocation71_spill] sm:$0xff] %v3328_v3 }
 0x157   : > { %1439 = vrot.lane.b32.xlu1 %v408_v52, %s2589_s19  ;;  %1403 = vrot.lane.b32.xlu0 %v390_v22, %s2589_s19  ;;  %v338_v22 = vld [vmem:[%s2665_s28 + $0xcc] sm:$0xff] }
 0x159   : > { %v3332_v54 = vpop.permute.xlu1 %777  ;;  %v3334_v17 = vpop.permute.xlu0 %775 }
 0x15a   : > { %4455 = vst [vmem:[#allocation72_spill] sm:$0xff] %v3332_v54  ;;  %4456 = vst [vmem:[#allocation73_spill] sm:$0xff] %v3334_v17  ;;  %v320_v54 = vld [vmem:[%s2665_s28 + $0x3c] sm:$0xff] }
 0x15b   : > { %1045 = vrot.lane.b32.xlu1 %v3264_v58, %s2586_s6  ;;  %1009 = vrot.lane.b32.xlu0 %v3267_v59, %s2586_s6  ;;  %v373_v59 = vld [vmem:[%s2665_s28 + $0xc5] sm:$0xff] }
 0x15d   : > { %v3342_v15 = vpop.permute.xlu1 %781  ;;  %v3344_v52 = vpop.permute.xlu0 %779 }
 0x15e   : > { %4457 = vst [vmem:[#allocation74_spill] sm:$0xff] %v3342_v15  ;;  %4458 = vst [vmem:[#allocation75_spill] sm:$0xff] %v3344_v52  ;;  %v355_v15 = vld [vmem:[%s2665_s28 + $0x35] sm:$0xff] }
 0x15f   : > { %1153 = vrot.lane.b32.xlu1 %v337_v16, %s2587_s24  ;;  %1117 = vrot.lane.b32.xlu0 %v319_v23, %s2587_s24 }
 0x161   : > { %v3350_v17 = vpop.permute.xlu1 %785  ;;  %v3352_v58 = vpop.permute.xlu0 %783 }
 0x162   : > { %4459 = vst [vmem:[#allocation76_spill] sm:$0xff] %v3350_v17  ;;  %4460 = vst [vmem:[#allocation77_spill] sm:$0xff] %v3352_v58  ;;  %v356_v17 = vld [vmem:[%s2665_s28 + $0x3d] sm:$0xff] }
 0x163   : > { %1155 = vrot.lane.b32.xlu1 %v338_v22, %s2587_s24  ;;  %1119 = vrot.lane.b32.xlu0 %v320_v54, %s2587_s24 }
 0x165   : > { %v3358_v52 = vpop.permute.xlu1 %861  ;;  %v3360_v3 = vpop.permute.xlu0 %859 }
 0x167   : > { %1297 = vrot.lane.b32.xlu1 %v373_v59, %s2588_s8  ;;  %1261 = vrot.lane.b32.xlu0 %v355_v15, %s2588_s8 }
 0x169   : > { %v3366_v58 = vpop.permute.xlu1 %865  ;;  %v3368_v21 = vpop.permute.xlu0 %863 }
 0x16b   : > { %1299 = vrot.lane.b32.xlu1 %v374_v39, %s2588_s8  ;;  %1263 = vrot.lane.b32.xlu0 %v356_v17, %s2588_s8  ;;  %v410_v17 = vld [vmem:[%s2665_s28 + $0xce] sm:$0xff]  ;;  %v392_v39 = vld [vmem:[%s2665_s28 + $0x3e] sm:$0xff] }
 0x16d   : > { %v3374_v35 = vpop.permute.xlu1 %869  ;;  %v3376_v13 = vpop.permute.xlu0 %867 }
 0x16e   : > { %4461 = vst [vmem:[#allocation78_spill] sm:$0xff] %v3374_v35 }
 0x16f   : > { %1441 = vrot.lane.b32.xlu1 %v409_v6, %s2589_s19  ;;  %1405 = vrot.lane.b32.xlu0 %v391_v53, %s2589_s19 }
 0x171   : > { %v3380_v15 = vpop.permute.xlu1 %873  ;;  %v3382_v59 = vpop.permute.xlu0 %871 }
 0x172   : > { %4462 = vst [vmem:[#allocation79_spill] sm:$0xff] %v3380_v15  ;;  %4463 = vst [vmem:[#allocation80_spill] sm:$0xff] %v3382_v59 }
 0x173   : > { %1047 = vrot.lane.b32.xlu1 %v337_v16, %s2586_s6  ;;  %1011 = vrot.lane.b32.xlu0 %v319_v23, %s2586_s6  ;;  %v339_v16 = vld [vmem:[%s2665_s28 + $0xd4] sm:$0xff]  ;;  %v321_v23 = vld [vmem:[%s2665_s28 + $0x44] sm:$0xff] }
 0x175   : > { %v3388_v34 = vpop.permute.xlu1 %877  ;;  %v3390_v57 = vpop.permute.xlu0 %875 }
 0x176   : > { %4464 = vst [vmem:[#allocation81_spill] sm:$0xff] %v3388_v34  ;;  %4465 = vst [vmem:[#allocation82_spill] sm:$0xff] %v3390_v57  ;;  %v376_v57 = vld [vmem:[%s2665_s28 + $0xdd] sm:$0xff] }
 0x177   : > { %1443 = vrot.lane.b32.xlu1 %v410_v17, %s2589_s19  ;;  %1407 = vrot.lane.b32.xlu0 %v392_v39, %s2589_s19  ;;  %v340_v17 = vld [vmem:[%s2665_s28 + $0xdc] sm:$0xff]  ;;  %v322_v39 = vld [vmem:[%s2665_s28 + $0x4c] sm:$0xff] }
 0x179   : > { %v3394_v53 = vpop.permute.xlu1 %881  ;;  %v3396_v6 = vpop.permute.xlu0 %879 }
 0x17a   : > { %4466 = vst [vmem:[#allocation83_spill] sm:$0xff] %v3394_v53  ;;  %4467 = vst [vmem:[#allocation84_spill] sm:$0xff] %v3396_v6 }
 0x17b   : > { %1049 = vrot.lane.b32.xlu1 %v338_v22, %s2586_s6  ;;  %1013 = vrot.lane.b32.xlu0 %v320_v54, %s2586_s6  ;;  %v375_v54 = vld [vmem:[%s2665_s28 + $0xd5] sm:$0xff] }
 0x17d   : > { %v3402_v15 = vpop.permute.xlu1 %885  ;;  %v3404_v34 = vpop.permute.xlu0 %883 }
 0x17e   : > { %4468 = vst [vmem:[#allocation85_spill] sm:$0xff] %v3402_v15  ;;  %4469 = vst [vmem:[#allocation86_spill] sm:$0xff] %v3404_v34  ;;  %v357_v15 = vld [vmem:[%s2665_s28 + $0x45] sm:$0xff] }
 0x17f   : > { %1157 = vrot.lane.b32.xlu1 %v339_v16, %s2587_s24  ;;  %1121 = vrot.lane.b32.xlu0 %v321_v23, %s2587_s24 }
 0x181   : > { %v3410_v53 = vpop.permute.xlu1 %889  ;;  %v3412_v22 = vpop.permute.xlu0 %887 }
 0x182   : > { %4470 = vst [vmem:[#allocation87_spill] sm:$0xff] %v3410_v53  ;;  %4471 = vst [vmem:[#allocation88_spill] sm:$0xff] %v3412_v22  ;;  %v358_v53 = vld [vmem:[%s2665_s28 + $0x4d] sm:$0xff] }
 0x183   : > { %1159 = vrot.lane.b32.xlu1 %v340_v17, %s2587_s24  ;;  %1123 = vrot.lane.b32.xlu0 %v322_v39, %s2587_s24 }
 0x185   : > { %v3418_v34 = vpop.permute.xlu1 %893  ;;  %v3420_v6 = vpop.permute.xlu0 %891 }
 0x186   : > { %4472 = vst [vmem:[#allocation89_spill] sm:$0xff] %v3418_v34  ;;  %4473 = vst [vmem:[#allocation90_spill] sm:$0xff] %v3420_v6  ;;  %v393_v34 = vld [vmem:[%s2665_s28 + $0x46] sm:$0xff] }
 0x187   : > { %1301 = vrot.lane.b32.xlu1 %v375_v54, %s2588_s8  ;;  %1265 = vrot.lane.b32.xlu0 %v357_v15, %s2588_s8 }
 0x189   : > { %v3426_v22 = vpop.permute.xlu1 %897  ;;  %v3428_v24 = vpop.permute.xlu0 %895 }
 0x18b   : > { %1303 = vrot.lane.b32.xlu1 %v376_v57, %s2588_s8  ;;  %1267 = vrot.lane.b32.xlu0 %v358_v53, %s2588_s8  ;;  %v412_v57 = vld [vmem:[%s2665_s28 + $0xde] sm:$0xff]  ;;  %v394_v53 = vld [vmem:[%s2665_s28 + $0x4e] sm:$0xff] }
 0x18d   : > { %v3434_v32 = vpop.permute.xlu1 %901  ;;  %v3436_v6 = vpop.permute.xlu0 %899 }
 0x18f   : > { %1445 = vrot.lane.b32.xlu1 %v411_v50, %s2589_s19  ;;  %1409 = vrot.lane.b32.xlu0 %v393_v34, %s2589_s19 }
 0x191   : > { %v3440_v15 = vpop.permute.xlu1 %905  ;;  %v3442_v54 = vpop.permute.xlu0 %903 }
 0x192   : > { %4474 = vst [vmem:[#allocation91_spill] sm:$0xff] %v3440_v15 }
 0x193   : > { %1051 = vrot.lane.b32.xlu1 %v339_v16, %s2586_s6  ;;  %1015 = vrot.lane.b32.xlu0 %v321_v23, %s2586_s6  ;;  %v341_v16 = vld [vmem:[%s2665_s28 + $0xe4] sm:$0xff]  ;;  %v323_v23 = vld [vmem:[%s2665_s28 + $0x54] sm:$0xff] }
 0x195   : > { %v3448_v8 = vpop.permute.xlu1 %909  ;;  %v3450_v59 = vpop.permute.xlu0 %907 }
 0x196   : > { %4475 = vst [vmem:[#allocation92_spill] sm:$0xff] %v3448_v8  ;;  %4476 = vst [vmem:[#allocation93_spill] sm:$0xff] %v3450_v59  ;;  %v378_v59 = vld [vmem:[%s2665_s28 + $0xed] sm:$0xff] }
 0x197   : > { %1447 = vrot.lane.b32.xlu1 %v412_v57, %s2589_s19  ;;  %1411 = vrot.lane.b32.xlu0 %v394_v53, %s2589_s19  ;;  %v342_v57 = vld [vmem:[%s2665_s28 + $0xec] sm:$0xff]  ;;  %v324_v53 = vld [vmem:[%s2665_s28 + $0x5c] sm:$0xff] }
 0x199   : > { %v3454_v34 = vpop.permute.xlu1 %913  ;;  %v3456_v50 = vpop.permute.xlu0 %911 }
 0x19a   : > { %4477 = vst [vmem:[#allocation94_spill] sm:$0xff] %v3454_v34  ;;  %4478 = vst [vmem:[#allocation95_spill] sm:$0xff] %v3456_v50 }
 0x19b   : > { %1053 = vrot.lane.b32.xlu1 %v340_v17, %s2586_s6  ;;  %1017 = vrot.lane.b32.xlu0 %v322_v39, %s2586_s6  ;;  %v377_v39 = vld [vmem:[%s2665_s28 + $0xe5] sm:$0xff] }
 0x19d   : > { %v3462_v12 = vpop.permute.xlu1 %917  ;;  %v3464_v8 = vpop.permute.xlu0 %915 }
 0x19e   : > { %4479 = vst [vmem:[#allocation96_spill] sm:$0xff] %v3462_v12  ;;  %4480 = vst [vmem:[#allocation97_spill] sm:$0xff] %v3464_v8  ;;  %v359_v12 = vld [vmem:[%s2665_s28 + $0x55] sm:$0xff] }
 0x19f   : > { %1161 = vrot.lane.b32.xlu1 %v341_v16, %s2587_s24  ;;  %1125 = vrot.lane.b32.xlu0 %v323_v23, %s2587_s24 }
 0x1a1   : > { %v3470_v34 = vpop.permute.xlu1 %921  ;;  %v3472_v17 = vpop.permute.xlu0 %919 }
 0x1a2   : > { %4481 = vst [vmem:[#allocation98_spill] sm:$0xff] %v3470_v34  ;;  %4482 = vst [vmem:[#allocation99_spill] sm:$0xff] %v3472_v17  ;;  %v360_v34 = vld [vmem:[%s2665_s28 + $0x5d] sm:$0xff] }
 0x1a3   : > { %1163 = vrot.lane.b32.xlu1 %v342_v57, %s2587_s24  ;;  %1127 = vrot.lane.b32.xlu0 %v324_v53, %s2587_s24 }
 0x1a5   : > { %v3478_v8 = vpop.permute.xlu1 %925  ;;  %v3480_v50 = vpop.permute.xlu0 %923 }
 0x1a6   : > { %4483 = vst [vmem:[#allocation100_spill] sm:$0xff] %v3478_v8  ;;  %4484 = vst [vmem:[#allocation101_spill] sm:$0xff] %v3480_v50 }
 0x1a7   : > { %1305 = vrot.lane.b32.xlu1 %v377_v39, %s2588_s8  ;;  %1269 = vrot.lane.b32.xlu0 %v359_v12, %s2588_s8 }
 0x1a9   : > { %v1040_v17 = vpop.permute.xlu1 %1039  ;;  %v1004_v41 = vpop.permute.xlu0 %1003 }
 0x1ab   : > { %1307 = vrot.lane.b32.xlu1 %v378_v59, %s2588_s8  ;;  %1271 = vrot.lane.b32.xlu0 %v360_v34, %s2588_s8  ;;  %v414_v59 = vld [vmem:[%s2665_s28 + $0xee] sm:$0xff]  ;;  %v396_v34 = vld [vmem:[%s2665_s28 + $0x5e] sm:$0xff] }
 0x1ad   : > { %v3490_v8 = vpop.permute.xlu1 %1041  ;;  %v3492_v50 = vpop.permute.xlu0 %1005 }
 0x1af   : > { %1449 = vrot.lane.b32.xlu1 %v413_v56, %s2589_s19  ;;  %1413 = vrot.lane.b32.xlu0 %v395_v51, %s2589_s19  ;;  %v169_v51 = vld [vmem:[%s2665_s28] sm:$0xff]  ;;  %v187_v56 = vld [vmem:[%s2665_s28 + $0x90] sm:$0xff] }
 0x1b0   : > { %v1528_v35 = vsel %vm1509_vm0, %v187_v56, %v2959_v27 }
 0x1b1   : > { %v1150_v12 = vpop.permute.xlu1 %1149  ;;  %v1114_v39 = vpop.permute.xlu0 %1113 }
 0x1b3   : > { %1055 = vrot.lane.b32.xlu1 %v341_v16, %s2586_s6  ;;  %1019 = vrot.lane.b32.xlu0 %v323_v23, %s2586_s6  ;;  %v1510_v23 = vsel %vm1509_vm0, %v169_v51, %v2851_v61  ;;  %v3522_v61 = vld [vmem:[%s2665_s28 + $0x64] sm:$0xff] }
 0x1b4   : > { %v170_v51 = vld [vmem:[%s2665_s28 + $0x8] sm:$0xff] }
 0x1b5   : > { %v3500_v33 = vpop.permute.xlu1 %1151  ;;  %v3502_v9 = vpop.permute.xlu0 %1115 }
 0x1b7   : > { %1451 = vrot.lane.b32.xlu1 %v414_v59, %s2589_s19  ;;  %1415 = vrot.lane.b32.xlu0 %v396_v34, %s2589_s19  ;;  %v1547_v59 = vsel %vm1546_vm1, %v1510_v23, %v3031_v45  ;;  %v1565_v34 = vsel %vm1546_vm1, %v1528_v35, %v3105_v19 }
 0x1b8   : > { %v1584_v27 = vsel %vm1583_vm2, %v1547_v59, %v3177_v11  ;;  %v3543_v59 = vld [vmem:[%s2665_s28 + $0xfc] sm:$0xff] }
 0x1b9   : > { %v1294_v15 = vpop.permute.xlu1 %1293  ;;  %v1258_v16 = vpop.permute.xlu0 %1257  ;;  %v1621_v35 = vsel %vm1620_vm3, %v1584_v27, %v3360_v3 }
 0x1ba   : > { %v1658_v11 = vsel %vm1657_vm4, %v1621_v35, %v1004_v41 }
 0x1bb   : > { %1057 = vrot.lane.b32.xlu1 %v342_v57, %s2586_s6  ;;  %1021 = vrot.lane.b32.xlu0 %v324_v53, %s2586_s6  ;;  %v1602_v57 = vsel %vm1583_vm2, %v1565_v34, %v3271_v36  ;;  %v188_v36 = vld [vmem:[%s2665_s28 + $0x98] sm:$0xff]  ;;  %v1695_v3 = vsel %vm1694_vm5, %v1658_v11, %v1114_v39 }
 0x1bc   : > { %v1639_v19 = vsel %vm1620_vm3, %v1602_v57, %v3428_v24  ;;  %v3546_v24 = vld [vmem:[%s2665_s28 + $0x6c] sm:$0xff]  ;;  %v1732_v41 = vsel %vm1731_vm6, %v1695_v3, %v1258_v16  ;;  %v1529_v39 = vsel %vm1509_vm0, %v188_v36, %v2957_v26 }
 0x1bd   : > { %v1296_v53 = vpop.permute.xlu1 %1295  ;;  %v1260_v45 = vpop.permute.xlu0 %1259  ;;  %v1676_v56 = vsel %vm1657_vm4, %v1639_v19, %v1040_v17  ;;  %v1566_v16 = vsel %vm1546_vm1, %v1529_v39, %v3103_v18  ;;  %v361_v26 = vld [vmem:[%s2665_s28 + $0x65] sm:$0xff] }
 0x1be   : > { %v1713_v23 = vsel %vm1694_vm5, %v1676_v56, %v1150_v12  ;;  %v1511_v12 = vsel %vm1509_vm0, %v170_v51, %v2865_v1  ;;  %v379_v1 = vld [vmem:[%s2665_s28 + $0xf5] sm:$0xff]  ;;  %v1603_v51 = vsel %vm1583_vm2, %v1566_v16, %v3269_v20 }
 0x1bf   : > { %1165 = vrot.lane.b32.xlu1 %v3519_v43, %s2587_s24  ;;  %1129 = vrot.lane.b32.xlu0 %v3522_v61, %s2587_s24  ;;  %v1750_v17 = vsel %vm1731_vm6, %v1713_v23, %v1294_v15  ;;  %v1548_v15 = vsel %vm1546_vm1, %v1511_v12, %v3029_v44  ;;  %v1640_v18 = vsel %vm1620_vm3, %v1603_v51, %v3426_v22  ;;  %v362_v22 = vld [vmem:[%s2665_s28 + $0x6d] sm:$0xff] }
 0x1c0   : > { %v1585_v19 = vsel %vm1583_vm2, %v1548_v15, %v3175_v7  ;;  %v1677_v36 = vsel %vm1657_vm4, %v1640_v18, %v3490_v8  ;;  %v398_v12 = vld [vmem:[%s2665_s28 + $0x6e] sm:$0xff]  ;;  %v3627_v18 = vld [vmem:[%s2665_s28 + $0x104] sm:$0xff] }
 0x1c1   : > { %v1438_v34 = vpop.permute.xlu1 %1437  ;;  %v1402_v27 = vpop.permute.xlu0 %1401  ;;  %v1622_v44 = vsel %vm1620_vm3, %v1585_v19, %v3358_v52  ;;  %v1714_v7 = vsel %vm1694_vm5, %v1677_v36, %v3500_v33  ;;  %v380_v52 = vld [vmem:[%s2665_s28 + $0xfd] sm:$0xff]  ;;  %v397_v33 = vld [vmem:[%s2665_s28 + $0x66] sm:$0xff]  ;;  %v171_v16 = vld [vmem:[%s2665_s28 + $0x10] sm:$0xff] }
 0x1c2   : > { %v1769_v57 = vsel %vm1768_vm7, %v1732_v41, %v1402_v27  ;;  %v1787_v35 = vsel %vm1768_vm7, %v1750_v17, %v1438_v34  ;;  %v1659_v23 = vsel %vm1657_vm4, %v1622_v44, %v3492_v50  ;;  %v1751_v3 = vsel %vm1731_vm6, %v1714_v7, %v1296_v53 }
 0x1c3   : > { %1167 = vrot.lane.b32.xlu1 %v3543_v59, %s2587_s24  ;;  %1131 = vrot.lane.b32.xlu0 %v3546_v24, %s2587_s24  ;;  %v1696_v20 = vsel %vm1694_vm5, %v1659_v23, %v3502_v9  ;;  %v415_v9 = vld [vmem:[%s2665_s28 + $0xf6] sm:$0xff] }
 0x1c4   : > { %2395 = vmatprep.mubr.msk.f32.mxu0 %vm1821_vm8, %v1769_v57  ;;  %2422 = vmatprep.mubr.msk.f32.mxu1 %vm1821_vm8, %v1787_v35  ;;  %v1733_v8 = vsel %vm1731_vm6, %v1696_v20, %v1260_v45  ;;  %v416_v35 = vld [vmem:[%s2665_s28 + $0xfe] sm:$0xff] }
 0x1c5   : > { %v1044_v56 = vpop.permute.xlu1 %1043  ;;  %v1008_v11 = vpop.permute.xlu0 %1007  ;;  %v172_v23 = vld [vmem:[%s2665_s28 + $0x18] sm:$0xff] }
 0x1c7   : > { %1309 = vrot.lane.b32.xlu1 %v379_v1, %s2588_s8  ;;  %1273 = vrot.lane.b32.xlu0 %v361_v26, %s2588_s8  ;;  %v189_v1 = vld [vmem:[%s2665_s28 + $0xa0] sm:$0xff] }
 0x1c9   : > { %v1440_v17 = vpop.permute.xlu1 %1439  ;;  %v1404_v50 = vpop.permute.xlu0 %1403 }
 0x1ca   : > { %v1788_v41 = vsel %vm1768_vm7, %v1751_v3, %v1440_v17  ;;  %v1770_v34 = vsel %vm1768_vm7, %v1733_v8, %v1404_v50  ;;  %v1513_v50 = vsel %vm1509_vm0, %v172_v23, %v2863_v0  ;;  %v381_v0 = vld [vmem:[%s2665_s28 + $0x105] sm:$0xff]  ;;  %v191_v23 = vld [vmem:[%s2665_s28 + $0xb0] sm:$0xff] }
 0x1cb   : > { %1311 = vrot.lane.b32.xlu1 %v380_v52, %s2588_s8  ;;  %1275 = vrot.lane.b32.xlu0 %v362_v22, %s2588_s8 }
 0x1cc   : > { %2396 = vmatmul.mubr.msk.f32.vlgmr.msra.gmra.mxu0 %vm1821_vm8, %v1770_v34  ;;  %2423 = vmatmul.mubr.msk.f32.vlgmr.msra.gmra.mxu1 %vm1821_vm8, %v1788_v41  ;;  %v1550_v34 = vsel %vm1546_vm1, %v1513_v50, %v3037_v46 }
 0x1cd   : > { %v3598_v53 = vpop.permute.xlu1 %1045  ;;  %v3600_v45 = vpop.permute.xlu0 %1009 }
 0x1cf   : > { %1453 = vrot.lane.b32.xlu1 %v415_v9, %s2589_s19  ;;  %1417 = vrot.lane.b32.xlu0 %v397_v33, %s2589_s19  ;;  %v1587_v33 = vsel %vm1583_vm2, %v1550_v34, %v3183_v42 }
 0x1d0   : > { %v1624_v46 = vsel %vm1620_vm3, %v1587_v33, %v3366_v58  ;;  %v382_v58 = vld [vmem:[%s2665_s28 + $0x10d] sm:$0xff] }
 0x1d1   : > { %v1154_v27 = vpop.permute.xlu1 %1153  ;;  %v1118_v57 = vpop.permute.xlu0 %1117 }
 0x1d3   : > { %1059 = vrot.lane.b32.xlu1 %v3519_v43, %s2586_s6  ;;  %1023 = vrot.lane.b32.xlu0 %v3522_v61, %s2586_s6  ;;  %v1512_v43 = vsel %vm1509_vm0, %v171_v16, %v2849_v60  ;;  %v1530_v61 = vsel %vm1509_vm0, %v189_v1, %v2967_v29  ;;  %v3630_v60 = vld [vmem:[%s2665_s28 + $0x74] sm:$0xff]  ;;  %v1661_v16 = vsel %vm1657_vm4, %v1624_v46, %v3600_v45  ;;  %v364_v1 = vld [vmem:[%s2665_s28 + $0x7d] sm:$0xff] }
 0x1d4   : > { %v1549_v51 = vsel %vm1546_vm1, %v1512_v43, %v3039_v47  ;;  %v1567_v44 = vsel %vm1546_vm1, %v1530_v61, %v3113_v63  ;;  %v4485_v46 = vld [vmem:[#allocation65_spill] sm:$0xff] }
 0x1d5   : > { %v1156_v39 = vpop.permute.xlu1 %1155  ;;  %v1120_v15 = vpop.permute.xlu0 %1119  ;;  %v1586_v29 = vsel %vm1583_vm2, %v1549_v51, %v3185_v25 }
 0x1d6   : > { %v1623_v47 = vsel %vm1620_vm3, %v1586_v29, %v3368_v21  ;;  %v3651_v21 = vld [vmem:[%s2665_s28 + $0x10c] sm:$0xff]  ;;  %v1698_v42 = vsel %vm1694_vm5, %v1661_v16, %v1120_v15  ;;  %v399_v15 = vld [vmem:[%s2665_s28 + $0x76] sm:$0xff] }
 0x1d7   : > { %1455 = vrot.lane.b32.xlu1 %v416_v35, %s2589_s19  ;;  %1419 = vrot.lane.b32.xlu0 %v398_v12, %s2589_s19  ;;  %v1660_v20 = vsel %vm1657_vm4, %v1623_v47, %v1008_v11 }
 0x1d8   : > { %v1697_v52 = vsel %vm1694_vm5, %v1660_v20, %v1118_v57 }
 0x1d9   : > { %v1298_v26 = vpop.permute.xlu1 %1297  ;;  %v1262_v19 = vpop.permute.xlu0 %1261 }
 0x1da   : > { %v1734_v11 = vsel %vm1731_vm6, %v1697_v52, %v1262_v19  ;;  %v3733_v52 = vld [vmem:[%s2665_s28 + $0x114] sm:$0xff] }
 0x1db   : > { %1061 = vrot.lane.b32.xlu1 %v3543_v59, %s2586_s6  ;;  %1025 = vrot.lane.b32.xlu0 %v3546_v24, %s2586_s6  ;;  %v1604_v59 = vsel %vm1583_vm2, %v1567_v44, %v3287_v37  ;;  %v190_v37 = vld [vmem:[%s2665_s28 + $0xa8] sm:$0xff] }
 0x1dc   : > { %v1641_v63 = vsel %vm1620_vm3, %v1604_v59, %v3436_v6  ;;  %v3654_v6 = vld [vmem:[%s2665_s28 + $0x7c] sm:$0xff]  ;;  %v1531_v41 = vsel %vm1509_vm0, %v190_v37, %v2965_v28  ;;  %v418_v59 = vld [vmem:[%s2665_s28 + $0x10e] sm:$0xff] }
 0x1dd   : > { %v1300_v24 = vpop.permute.xlu1 %1299  ;;  %v1264_v36 = vpop.permute.xlu0 %1263  ;;  %v1678_v7 = vsel %vm1657_vm4, %v1641_v63, %v1044_v56  ;;  %v1568_v9 = vsel %vm1546_vm1, %v1531_v41, %v3111_v62  ;;  %v363_v28 = vld [vmem:[%s2665_s28 + $0x75] sm:$0xff]  ;;  %v173_v63 = vld [vmem:[%s2665_s28 + $0x20] sm:$0xff] }
 0x1de   : > { %v1715_v25 = vsel %vm1694_vm5, %v1678_v7, %v1154_v27  ;;  %v1605_v27 = vsel %vm1583_vm2, %v1568_v9, %v3285_v55 }
 0x1df   : > { %1169 = vrot.lane.b32.xlu1 %v3627_v18, %s2587_s24  ;;  %1133 = vrot.lane.b32.xlu0 %v3630_v60, %s2587_s24  ;;  %v1752_v56 = vsel %vm1731_vm6, %v1715_v25, %v1298_v26  ;;  %v1642_v62 = vsel %vm1620_vm3, %v1605_v27, %v3434_v32  ;;  %v1735_v26 = vsel %vm1731_vm6, %v1698_v42, %v1264_v36 }
 0x1e0   : > { %v1679_v12 = vsel %vm1657_vm4, %v1642_v62, %v3598_v53 }
 0x1e1   : > { %v1442_v22 = vpop.permute.xlu1 %1441  ;;  %v1406_v3 = vpop.permute.xlu0 %1405  ;;  %v1716_v55 = vsel %vm1694_vm5, %v1679_v12, %v1156_v39  ;;  %v417_v39 = vld [vmem:[%s2665_s28 + $0x106] sm:$0xff] }
 0x1e2   : > { %v1789_v8 = vsel %vm1768_vm7, %v1752_v56, %v1442_v22  ;;  %v1771_v17 = vsel %vm1768_vm7, %v1734_v11, %v1406_v3  ;;  %v1753_v32 = vsel %vm1731_vm6, %v1716_v55, %v1300_v24  ;;  %v400_v24 = vld [vmem:[%s2665_s28 + $0x7e] sm:$0xff]  ;;  %v174_v11 = vld [vmem:[%s2665_s28 + $0x28] sm:$0xff] }
 0x1e3   : > { %1171 = vrot.lane.b32.xlu1 %v3651_v21, %s2587_s24  ;;  %1135 = vrot.lane.b32.xlu0 %v3654_v6, %s2587_s24 }
 0x1e4   : > { %2398 = vmatprep.mubr.msk.f32.mxu0 %vm1821_vm8, %v1771_v17  ;;  %2425 = vmatprep.mubr.msk.f32.mxu1 %vm1821_vm8, %v1789_v8 }
 0x1e5   : > { %v1048_v57 = vpop.permute.xlu1 %1047  ;;  %v1012_v35 = vpop.permute.xlu0 %1011 }
 0x1e7   : > { %1313 = vrot.lane.b32.xlu1 %v381_v0, %s2588_s8  ;;  %1277 = vrot.lane.b32.xlu0 %v363_v28, %s2588_s8  ;;  %v1515_v28 = vsel %vm1509_vm0, %v174_v11, %v2877_v4  ;;  %v383_v4 = vld [vmem:[%s2665_s28 + $0x115] sm:$0xff] }
 0x1e8   : > { %v1552_v27 = vsel %vm1546_vm1, %v1515_v28, %v3045_v48  ;;  %v4486_v48 = vld [vmem:[#allocation78_spill] sm:$0xff]  ;;  %v3842_v11 = vld [vmem:[%s2665_s28 + $0x94] sm:$0xff] }
 0x1e9   : > { %v1444_v53 = vpop.permute.xlu1 %1443  ;;  %v1408_v19 = vpop.permute.xlu0 %1407  ;;  %v194_v28 = vld [vmem:[%s2665_s28 + $0xc8] sm:$0xff] }
 0x1ea   : > { %v1790_v45 = vsel %vm1768_vm7, %v1753_v32, %v1444_v53  ;;  %v1772_v43 = vsel %vm1768_vm7, %v1735_v26, %v1408_v19  ;;  %v384_v26 = vld [vmem:[%s2665_s28 + $0x11d] sm:$0xff]  ;;  %v366_v53 = vld [vmem:[%s2665_s28 + $0x8d] sm:$0xff] }
 0x1eb   : > { %1315 = vrot.lane.b32.xlu1 %v382_v58, %s2588_s8  ;;  %1279 = vrot.lane.b32.xlu0 %v364_v1, %s2588_s8 }
 0x1ec   : > { %2399 = vmatmul.mubr.msk.f32.gmra.mxu0 %vm1821_vm8, %v1772_v43  ;;  %2426 = vmatmul.mubr.msk.f32.gmra.mxu1 %vm1821_vm8, %v1790_v45 }
 0x1ed   : > { %v3704_v61 = vpop.permute.xlu1 %1049  ;;  %v3706_v51 = vpop.permute.xlu0 %1013 }
 0x1ef   : > { %1457 = vrot.lane.b32.xlu1 %v417_v39, %s2589_s19  ;;  %1421 = vrot.lane.b32.xlu0 %v399_v15, %s2589_s19 }
 0x1f1   : > { %v1158_v44 = vpop.permute.xlu1 %1157  ;;  %v1122_v29 = vpop.permute.xlu0 %1121 }
 0x1f3   : > { %1063 = vrot.lane.b32.xlu1 %v3627_v18, %s2586_s6  ;;  %1027 = vrot.lane.b32.xlu0 %v3630_v60, %s2586_s6  ;;  %v1514_v18 = vsel %vm1509_vm0, %v173_v63, %v2879_v5  ;;  %v1532_v60 = vsel %vm1509_vm0, %v191_v23, %v2975_v31  ;;  %v3736_v5 = vld [vmem:[%s2665_s28 + $0x84] sm:$0xff]  ;;  %v402_v63 = vld [vmem:[%s2665_s28 + $0x8e] sm:$0xff] }
 0x1f4   : > { %v1551_v37 = vsel %vm1546_vm1, %v1514_v18, %v3047_v49  ;;  %v1569_v25 = vsel %vm1546_vm1, %v1532_v60, %v3121_v14  ;;  %v193_v18 = vld [vmem:[%s2665_s28 + $0xc0] sm:$0xff] }
 0x1f5   : > { %v1160_v36 = vpop.permute.xlu1 %1159  ;;  %v1124_v47 = vpop.permute.xlu0 %1123  ;;  %v1588_v31 = vsel %vm1583_vm2, %v1551_v37, %v3193_v40  ;;  %v192_v40 = vld [vmem:[%s2665_s28 + $0xb8] sm:$0xff] }
 0x1f6   : > { %v1625_v49 = vsel %vm1620_vm3, %v1588_v31, %v3376_v13  ;;  %v3757_v13 = vld [vmem:[%s2665_s28 + $0x11c] sm:$0xff]  ;;  %v1533_v33 = vsel %vm1509_vm0, %v192_v40, %v2973_v30  ;;  %v365_v30 = vld [vmem:[%s2665_s28 + $0x85] sm:$0xff]  ;;  %v4493_v40 = vld [vmem:[#allocation67_spill] sm:$0xff] }
 0x1f7   : > { %1459 = vrot.lane.b32.xlu1 %v418_v59, %s2589_s19  ;;  %1423 = vrot.lane.b32.xlu0 %v400_v24, %s2589_s19  ;;  %v1662_v3 = vsel %vm1657_vm4, %v1625_v49, %v1012_v35  ;;  %v1589_v35 = vsel %vm1583_vm2, %v1552_v27, %v3191_v38  ;;  %v4489_v31 = vld [vmem:[#allocation18_spill] sm:$0xff] }
 0x1f8   : > { %v1699_v8 = vsel %vm1694_vm5, %v1662_v3, %v1122_v29  ;;  %v1626_v55 = vsel %vm1620_vm3, %v1589_v35, %v4486_v48  ;;  %v4496_v48 = vld [vmem:[#allocation5_spill] sm:$0xff] }
 0x1f9   : > { %v1302_v7 = vpop.permute.xlu1 %1301  ;;  %v1266_v20 = vpop.permute.xlu0 %1265  ;;  %v1663_v1 = vsel %vm1657_vm4, %v1626_v55, %v3706_v51  ;;  %v419_v51 = vld [vmem:[%s2665_s28 + $0x116] sm:$0xff] }
 0x1fa   : > { %v1736_v50 = vsel %vm1731_vm6, %v1699_v8, %v1266_v20  ;;  %v1700_v32 = vsel %vm1694_vm5, %v1663_v1, %v1124_v47  ;;  %v420_v47 = vld [vmem:[%s2665_s28 + $0x11e] sm:$0xff]  ;;  %v175_v20 = vld [vmem:[%s2665_s28 + $0x30] sm:$0xff] }
 0x1fb   : > { %1065 = vrot.lane.b32.xlu1 %v3651_v21, %s2586_s6  ;;  %1029 = vrot.lane.b32.xlu0 %v3654_v6, %s2586_s6  ;;  %v1606_v21 = vsel %vm1583_vm2, %v1569_v25, %v3298_v2  ;;  %v4488_v25 = vld [vmem:[#allocation6_spill] sm:$0xff] }
 0x1fc   : > { %v1643_v14 = vsel %vm1620_vm3, %v1606_v21, %v3442_v54  ;;  %v3760_v54 = vld [vmem:[%s2665_s28 + $0x8c] sm:$0xff] }
 0x1fd   : > { %v1304_v6 = vpop.permute.xlu1 %1303  ;;  %v1268_v56 = vpop.permute.xlu0 %1267  ;;  %v1680_v22 = vsel %vm1657_vm4, %v1643_v14, %v1048_v57  ;;  %v1570_v57 = vsel %vm1546_vm1, %v1533_v33, %v3119_v10  ;;  %v4487_v10 = vld [vmem:[#allocation91_spill] sm:$0xff]  ;;  %v4490_v21 = vld [vmem:[#allocation30_spill] sm:$0xff] }
 0x1fe   : > { %v1717_v2 = vsel %vm1694_vm5, %v1680_v22, %v1158_v44  ;;  %v1607_v62 = vsel %vm1583_vm2, %v1570_v57, %v4485_v46  ;;  %v1737_v45 = vsel %vm1731_vm6, %v1700_v32, %v1268_v56  ;;  %v401_v44 = vld [vmem:[%s2665_s28 + $0x86] sm:$0xff] }
 0x1ff   : > { %1173 = vrot.lane.b32.xlu1 %v3733_v52, %s2587_s24  ;;  %1137 = vrot.lane.b32.xlu0 %v3736_v5, %s2587_s24  ;;  %v1754_v17 = vsel %vm1731_vm6, %v1717_v2, %v1302_v7  ;;  %v1644_v42 = vsel %vm1620_vm3, %v1607_v62, %v4487_v10  ;;  %v4491_v56 = vld [vmem:[#allocation42_spill] sm:$0xff]  ;;  %v4497_v10 = vld [vmem:[#allocation17_spill] sm:$0xff] }
 0x200   : > { %v1681_v58 = vsel %vm1657_vm4, %v1644_v42, %v3704_v61  ;;  %v3839_v14 = vld [vmem:[%s2665_s28 + $0x124] sm:$0xff]  ;;  %v3863_v57 = vld [vmem:[%s2665_s28 + $0x12c] sm:$0xff]  ;;  %v1535_v42 = vsel %vm1509_vm0, %v194_v28, %v4497_v10 }
 0x201   : > { %v1446_v41 = vpop.permute.xlu1 %1445  ;;  %v1410_v34 = vpop.permute.xlu0 %1409  ;;  %v1718_v38 = vsel %vm1694_vm5, %v1681_v58, %v1160_v36  ;;  %v4492_v22 = vld [vmem:[#allocation54_spill] sm:$0xff]  ;;  %v4498_v58 = vld [vmem:[#allocation29_spill] sm:$0xff]  ;;  %v4511_v10 = vld [vmem:[#allocation95_spill] sm:$0xff] }
 0x202   : > { %v1791_v9 = vsel %vm1768_vm7, %v1754_v17, %v1446_v41  ;;  %v1773_v0 = vsel %vm1768_vm7, %v1736_v50, %v1410_v34  ;;  %v1755_v19 = vsel %vm1731_vm6, %v1718_v38, %v1304_v6  ;;  %v4495_v50 = vld [vmem:[#allocation93_spill] sm:$0xff]  ;;  %v176_v34 = vld [vmem:[%s2665_s28 + $0x38] sm:$0xff] }
 0x203   : > { %1175 = vrot.lane.b32.xlu1 %v3757_v13, %s2587_s24  ;;  %1139 = vrot.lane.b32.xlu0 %v3760_v54, %s2587_s24  ;;  %v1517_v55 = vsel %vm1509_vm0, %v176_v34, %v4496_v48  ;;  %v4499_v38 = vld [vmem:[#allocation41_spill] sm:$0xff]  ;;  %v4504_v34 = vld [vmem:[#allocation8_spill] sm:$0xff]  ;;  %v4510_v48 = vld [vmem:[#allocation82_spill] sm:$0xff] }
 0x204   : > { %2401 = vmatprep.mubr.msk.f32.mxu0 %vm1821_vm8, %v1773_v0  ;;  %2428 = vmatprep.mubr.msk.f32.mxu1 %vm1821_vm8, %v1791_v9  ;;  %v1554_v1 = vsel %vm1546_vm1, %v1517_v55, %v4498_v58  ;;  %v1572_v32 = vsel %vm1546_vm1, %v1535_v42, %v4499_v38  ;;  %v178_v38 = vld [vmem:[%s2665_s28 + $0x48] sm:$0xff] }
 0x205   : > { %v1052_v12 = vpop.permute.xlu1 %1051  ;;  %v1016_v16 = vpop.permute.xlu0 %1015 }
 0x207   : > { %1317 = vrot.lane.b32.xlu1 %v383_v4, %s2588_s8  ;;  %1281 = vrot.lane.b32.xlu0 %v365_v30, %s2588_s8  ;;  %v3866_v4 = vld [vmem:[%s2665_s28 + $0x9c] sm:$0xff] }
 0x209   : > { %v1448_v43 = vpop.permute.xlu1 %1447  ;;  %v1412_v39 = vpop.permute.xlu0 %1411 }
 0x20a   : > { %v1792_v15 = vsel %vm1768_vm7, %v1755_v19, %v1448_v43  ;;  %v1774_v61 = vsel %vm1768_vm7, %v1737_v45, %v1412_v39  ;;  %v4500_v19 = vld [vmem:[#allocation53_spill] sm:$0xff]  ;;  %v4501_v43 = vld [vmem:[#allocation66_spill] sm:$0xff] }
 0x20b   : > { %1319 = vrot.lane.b32.xlu1 %v384_v26, %s2588_s8  ;;  %1283 = vrot.lane.b32.xlu0 %v366_v53, %s2588_s8  ;;  %v385_v26 = vld [vmem:[%s2665_s28 + $0x125] sm:$0xff]  ;;  %v367_v53 = vld [vmem:[%s2665_s28 + $0x95] sm:$0xff]  ;;  %v1591_v45 = vsel %vm1583_vm2, %v1554_v1, %v4500_v19  ;;  %v1609_v39 = vsel %vm1583_vm2, %v1572_v32, %v4501_v43 }
 0x20c   : > { %2402 = vmatmul.mubr.msk.f32.gmra.mxu0 %vm1821_vm8, %v1774_v61  ;;  %2429 = vmatmul.mubr.msk.f32.gmra.mxu1 %vm1821_vm8, %v1792_v15  ;;  %v196_v32 = vld [vmem:[%s2665_s28 + $0xd8] sm:$0xff] }
 0x20d   : > { %v3810_v29 = vpop.permute.xlu1 %1053  ;;  %v3812_v59 = vpop.permute.xlu0 %1017  ;;  %v351_v19 = vld [vmem:[%s2665_s28 + $0x134] sm:$0xff] }
 0x20f   : > { %1461 = vrot.lane.b32.xlu1 %v419_v51, %s2589_s19  ;;  %1425 = vrot.lane.b32.xlu0 %v401_v44, %s2589_s19  ;;  %v4502_v51 = vld [vmem:[#allocation79_spill] sm:$0xff] }
 0x210   : > { %v1628_v44 = vsel %vm1620_vm3, %v1591_v45, %v4502_v51  ;;  %v4512_v51 = vld [vmem:[#allocation7_spill] sm:$0xff] }
 0x211   : > { %v1162_v24 = vpop.permute.xlu1 %1161  ;;  %v1126_v36 = vpop.permute.xlu0 %1125 }
 0x213   : > { %1067 = vrot.lane.b32.xlu1 %v3733_v52, %s2586_s6  ;;  %1031 = vrot.lane.b32.xlu0 %v3736_v5, %s2586_s6  ;;  %v1516_v52 = vsel %vm1509_vm0, %v175_v20, %v4488_v25  ;;  %v1534_v5 = vsel %vm1509_vm0, %v193_v18, %v4489_v31 }
 0x214   : > { %v1553_v6 = vsel %vm1546_vm1, %v1516_v52, %v4490_v21  ;;  %v1571_v49 = vsel %vm1546_vm1, %v1534_v5, %v4491_v56  ;;  %v314_v56 = vld [vmem:[%s2665_s28 + $0x12b] sm:$0xff] }
 0x215   : > { %v1164_v23 = vpop.permute.xlu1 %1163  ;;  %v1128_v7 = vpop.permute.xlu0 %1127  ;;  %v1590_v3 = vsel %vm1583_vm2, %v1553_v6, %v4492_v22  ;;  %v1608_v2 = vsel %vm1583_vm2, %v1571_v49, %v4493_v40  ;;  %v421_v49 = vld [vmem:[%s2665_s28 + $0x126] sm:$0xff] }
 0x216   : > { %v1645_v41 = vsel %vm1620_vm3, %v1608_v2, %v4495_v50 }
 0x217   : > { %1463 = vrot.lane.b32.xlu1 %v420_v47, %s2589_s19  ;;  %1427 = vrot.lane.b32.xlu0 %v402_v63, %s2589_s19  ;;  %v1682_v9 = vsel %vm1657_vm4, %v1645_v41, %v1052_v12  ;;  %v1665_v63 = vsel %vm1657_vm4, %v1628_v44, %v3812_v59  ;;  %v4513_v44 = vld [vmem:[#allocation19_spill] sm:$0xff] }
 0x218   : > { %v1719_v33 = vsel %vm1694_vm5, %v1682_v9, %v1162_v24  ;;  %v4503_v24 = vld [vmem:[#allocation92_spill] sm:$0xff]  ;;  %v1702_v18 = vsel %vm1694_vm5, %v1665_v63, %v1128_v7  ;;  %v386_v7 = vld [vmem:[%s2665_s28 + $0x12d] sm:$0xff] }
 0x219   : > { %v1306_v60 = vpop.permute.xlu1 %1305  ;;  %v1270_v37 = vpop.permute.xlu0 %1269 }
 0x21a   : > { %v1756_v30 = vsel %vm1731_vm6, %v1719_v33, %v1306_v60  ;;  %v368_v60 = vld [vmem:[%s2665_s28 + $0x9d] sm:$0xff] }
 0x21b   : > { %1069 = vrot.lane.b32.xlu1 %v3757_v13, %s2586_s6  ;;  %1033 = vrot.lane.b32.xlu0 %v3760_v54, %s2586_s6  ;;  %v4494_v54 = vld [vmem:[#allocation80_spill] sm:$0xff] }
 0x21c   : > { %v1627_v17 = vsel %vm1620_vm3, %v1590_v3, %v4494_v54  ;;  %v422_v54 = vld [vmem:[%s2665_s28 + $0x12e] sm:$0xff]  ;;  %v4507_v33 = vld [vmem:[#allocation44_spill] sm:$0xff] }
 0x21d   : > { %v1308_v8 = vpop.permute.xlu1 %1307  ;;  %v1272_v13 = vpop.permute.xlu0 %1271  ;;  %v1664_v0 = vsel %vm1657_vm4, %v1627_v17, %v1016_v16  ;;  %v404_v17 = vld [vmem:[%s2665_s28 + $0x9e] sm:$0xff] }
 0x21e   : > { %v1701_v27 = vsel %vm1694_vm5, %v1664_v0, %v1126_v36  ;;  %v1646_v36 = vsel %vm1620_vm3, %v1609_v39, %v4503_v24  ;;  %v4505_v0 = vld [vmem:[#allocation20_spill] sm:$0xff]  ;;  %v1537_v24 = vsel %vm1509_vm0, %v196_v32, %v4513_v44 }
 0x21f   : > { %1177 = vrot.lane.b32.xlu1 %v3839_v14, %s2587_s24  ;;  %1141 = vrot.lane.b32.xlu0 %v3842_v11, %s2587_s24  ;;  %v1738_v35 = vsel %vm1731_vm6, %v1701_v27, %v1270_v37  ;;  %v1683_v47 = vsel %vm1657_vm4, %v1646_v36, %v3810_v29  ;;  %v313_v37 = vld [vmem:[%s2665_s28 + $0x123] sm:$0xff]  ;;  %v1739_v29 = vsel %vm1731_vm6, %v1702_v18, %v1272_v13  ;;  %v195_v13 = vld [vmem:[%s2665_s28 + $0xd0] sm:$0xff] }
 0x220   : > { %v1720_v20 = vsel %vm1694_vm5, %v1683_v47, %v1164_v23  ;;  %v403_v23 = vld [vmem:[%s2665_s28 + $0x96] sm:$0xff]  ;;  %v1536_v28 = vsel %vm1509_vm0, %v195_v13, %v4505_v0  ;;  %v2518_v36 = vld [vmem:[%s2665_s28 + $0xa4] sm:$0xff] }
 0x221   : > { %v1450_v46 = vpop.permute.xlu1 %1449  ;;  %v1414_v62 = vpop.permute.xlu0 %1413  ;;  %v1757_v25 = vsel %vm1731_vm6, %v1720_v20, %v1308_v8  ;;  %v177_v8 = vld [vmem:[%s2665_s28 + $0x40] sm:$0xff]  ;;  %v1573_v27 = vsel %vm1546_vm1, %v1536_v28, %v4507_v33  ;;  %v4514_v47 = vld [vmem:[#allocation31_spill] sm:$0xff] }
 0x222   : > { %v1793_v12 = vsel %vm1768_vm7, %v1756_v30, %v1450_v46  ;;  %v1775_v16 = vsel %vm1768_vm7, %v1738_v35, %v1414_v62  ;;  %v1518_v9 = vsel %vm1509_vm0, %v177_v8, %v4504_v34  ;;  %v4508_v30 = vld [vmem:[#allocation56_spill] sm:$0xff]  ;;  %v4509_v46 = vld [vmem:[#allocation69_spill] sm:$0xff]  ;;  %v4515_v20 = vld [vmem:[#allocation43_spill] sm:$0xff] }
 0x223   : > { %1179 = vrot.lane.b32.xlu1 %v3863_v57, %s2587_s24  ;;  %1143 = vrot.lane.b32.xlu0 %v3866_v4, %s2587_s24  ;;  %v1610_v62 = vsel %vm1583_vm2, %v1573_v27, %v4509_v46  ;;  %v1574_v18 = vsel %vm1546_vm1, %v1537_v24, %v4515_v20 }
 0x224   : > { %2404 = vmatprep.mubr.msk.f32.mxu0 %vm1821_vm8, %v1775_v16  ;;  %2431 = vmatprep.mubr.msk.f32.mxu1 %vm1821_vm8, %v1793_v12  ;;  %v1647_v42 = vsel %vm1620_vm3, %v1610_v62, %v4511_v10  ;;  %v4520_v10 = vld [vmem:[#allocation10_spill] sm:$0xff] }
 0x225   : > { %v1056_v15 = vpop.permute.xlu1 %1055  ;;  %v1020_v61 = vpop.permute.xlu0 %1019 }
 0x226   : > { %v1684_v58 = vsel %vm1657_vm4, %v1647_v42, %v1056_v15 }
 0x227   : > { %1321 = vrot.lane.b32.xlu1 %v385_v26, %s2588_s8  ;;  %1285 = vrot.lane.b32.xlu0 %v367_v53, %s2588_s8 }
 0x229   : > { %v1452_v52 = vpop.permute.xlu1 %1451  ;;  %v1416_v59 = vpop.permute.xlu0 %1415 }
 0x22a   : > { %v1794_v31 = vsel %vm1768_vm7, %v1757_v25, %v1452_v52  ;;  %v1776_v5 = vsel %vm1768_vm7, %v1739_v29, %v1416_v59  ;;  %v4517_v29 = vld [vmem:[#allocation68_spill] sm:$0xff] }
 0x22b   : > { %1287 = vrot.lane.b32.xlu1 %v368_v60, %s2588_s8  ;;  %927 = vrot.lane.b32.xlu0 %v313_v37, %s2585_s5  ;;  %v352_v60 = vld [vmem:[%s2665_s28 + $0x13c] sm:$0xff]  ;;  %v4516_v37 = vld [vmem:[#allocation55_spill] sm:$0xff]  ;;  %v1611_v52 = vsel %vm1583_vm2, %v1574_v18, %v4517_v29 }
 0x22c   : > { %2405 = vmatmul.mubr.msk.f32.gmra.mxu0 %vm1821_vm8, %v1776_v5  ;;  %2432 = vmatmul.mubr.msk.f32.gmra.mxu1 %vm1821_vm8, %v1794_v31  ;;  %v4518_v5 = vld [vmem:[#allocation81_spill] sm:$0xff] }
 0x22d   : > { %v3916_v21 = vpop.permute.xlu1 %1057  ;;  %v3918_v6 = vpop.permute.xlu0 %1021 }
 0x22f   : > { %1429 = vrot.lane.b32.xlu1 %v403_v23, %s2589_s19  ;;  %1323 = vrot.lane.b32.xlu0 %v386_v7, %s2588_s8  ;;  %v4519_v7 = vld [vmem:[#allocation94_spill] sm:$0xff] }
 0x231   : > { %v1166_v22 = vpop.permute.xlu1 %1165  ;;  %v1130_v3 = vpop.permute.xlu0 %1129 }
 0x232   : > { %v1721_v26 = vsel %vm1694_vm5, %v1684_v58, %v1166_v22  ;;  %v4521_v58 = vld [vmem:[#allocation22_spill] sm:$0xff] }
 0x233   : > { %929 = vrot.lane.b32.xlu1 %v314_v56, %s2585_s5  ;;  %1465 = vrot.lane.b32.xlu0 %v421_v49, %s2589_s19  ;;  %v1648_v56 = vsel %vm1620_vm3, %v1611_v52, %v4519_v7  ;;  %s161_s5 = sand.u32 1, %s2572_s13  }
 0x234   : > { %v1685_v49 = vsel %vm1657_vm4, %v1648_v56, %v3916_v21  ;;  %v4530_v56 = vld [vmem:[#allocation33_spill] sm:$0xff] }
 0x235   : > { %v1168_v40 = vpop.permute.xlu1 %1167  ;;  %v1132_v2 = vpop.permute.xlu0 %1131 }
 0x236   : > { %v1722_v8 = vsel %vm1694_vm5, %v1685_v49, %v1168_v40  ;;  %v388_v40 = vld [vmem:[%s2665_s28 + $0x13d] sm:$0xff] }
 0x237   : > { %1071 = vrot.lane.b32.xlu1 %v3839_v14, %s2586_s6  ;;  %1035 = vrot.lane.b32.xlu0 %v3842_v11, %s2586_s6  ;;  %v4506_v14 = vld [vmem:[#allocation32_spill] sm:$0xff] }
 0x238   : > { %v1555_v11 = vsel %vm1546_vm1, %v1518_v9, %v4506_v14  ;;  %v423_v14 = vld [vmem:[%s2665_s28 + $0x136] sm:$0xff] }
 0x239   : > { %v1310_v50 = vpop.permute.xlu1 %1309  ;;  %v1274_v41 = vpop.permute.xlu0 %1273  ;;  %v1592_v35 = vsel %vm1583_vm2, %v1555_v11, %v4508_v30  ;;  %v405_v11 = vld [vmem:[%s2665_s28 + $0xa6] sm:$0xff]  ;;  %v424_v30 = vld [vmem:[%s2665_s28 + $0x13e] sm:$0xff] }
 0x23a   : > { %v1629_v55 = vsel %vm1620_vm3, %v1592_v35, %v4510_v48  ;;  %v1758_v45 = vsel %vm1731_vm6, %v1721_v26, %v1310_v50  ;;  %v406_v35 = vld [vmem:[%s2665_s28 + $0xae] sm:$0xff] }
 0x23b   : > { %1467 = vrot.lane.b32.xlu1 %v422_v54, %s2589_s19  ;;  %1431 = vrot.lane.b32.xlu0 %v404_v17, %s2589_s19  ;;  %v1666_v1 = vsel %vm1657_vm4, %v1629_v55, %v1020_v61  ;;  %v387_v54 = vld [vmem:[%s2665_s28 + $0x135] sm:$0xff]  ;;  %v369_v17 = vld [vmem:[%s2665_s28 + $0xa5] sm:$0xff] }
 0x23c   : > { %v1703_v53 = vsel %vm1694_vm5, %v1666_v1, %v1130_v3  ;;  %v2519_v3 = vld [vmem:[%s2665_s28 + $0xac] sm:$0xff] }
 0x23d   : > { %v1312_v12 = vpop.permute.xlu1 %1311  ;;  %v1276_v16 = vpop.permute.xlu0 %1275  ;;  %v1740_v43 = vsel %vm1731_vm6, %v1703_v53, %v1274_v41  ;;  %v4523_v26 = vld [vmem:[#allocation46_spill] sm:$0xff] }
 0x23e   : > { %v1759_v50 = vsel %vm1731_vm6, %v1722_v8, %v1312_v12  ;;  %v179_v12 = vld [vmem:[%s2665_s28 + $0x50] sm:$0xff]  ;;  %v4532_v8 = vld [vmem:[#allocation57_spill] sm:$0xff] }
 0x23f   : > { %1073 = vrot.lane.b32.xlu1 %v3863_v57, %s2586_s6  ;;  %1037 = vrot.lane.b32.xlu0 %v3866_v4, %s2586_s6  ;;  %v1519_v4 = vsel %vm1509_vm0, %v178_v38, %v4512_v51  ;;  %v1520_v42 = vsel %vm1509_vm0, %v179_v12, %v4520_v10  ;;  %v4522_v38 = vld [vmem:[#allocation34_spill] sm:$0xff]  ;;  %v181_v10 = vld [vmem:[%s2665_s28 + $0x60] sm:$0xff]  ;;  %s2467_s6 = smul.u32 288, %s161_s5 }
 0x240   : > { %v1556_v63 = vsel %vm1546_vm1, %v1519_v4, %v4514_v47  ;;  %v1557_v32 = vsel %vm1546_vm1, %v1520_v42, %v4522_v38  ;;  %v4527_v4 = vld [vmem:[#allocation97_spill] sm:$0xff]  ;;  %v180_v47 = vld [vmem:[%s2665_s28 + $0x58] sm:$0xff]  ;;  %v199_v42 = vld [vmem:[%s2665_s28 + $0xf0] sm:$0xff] }
 0x241   : > { %v1454_v39 = vpop.permute.xlu1 %1453  ;;  %v1418_v15 = vpop.permute.xlu0 %1417  ;;  %v1593_v25 = vsel %vm1583_vm2, %v1556_v63, %v4516_v37  ;;  %v198_v63 = vld [vmem:[%s2665_s28 + $0xe8] sm:$0xff]  ;;  %v4536_v38 = vld [vmem:[#allocation12_spill] sm:$0xff]  ;;  %s4142_s25 = scalar_lea.vmem [#allocation2], %s2467_s6 }
 0x242   : > { %v1795_v57 = vsel %vm1768_vm7, %v1758_v45, %v1454_v39  ;;  %v1777_v61 = vsel %vm1768_vm7, %v1740_v43, %v1418_v15  ;;  %v1630_v23 = vsel %vm1620_vm3, %v1593_v25, %v4518_v5  ;;  %v4525_v43 = vld [vmem:[#allocation71_spill] sm:$0xff]  ;;  %s2225_s26 = sshll.u32 %s4142_s25, 4  ;;  %s4335_s26 = int_to_ptr.vmem [resolvable:$true] %s2225_s26 }
 0x243   : > { %1181 = vrot.lane.b32.xlu1 %v351_v19, %s2587_s24  ;;  %1145 = vrot.lane.b32.xlu0 %v2518_v36, %s2587_s24  ;;  %v1667_v22 = vsel %vm1657_vm4, %v1630_v23, %v3918_v6  ;;  %v4524_v19 = vld [vmem:[#allocation58_spill] sm:$0xff]  ;;  %v4528_v23 = vld [vmem:[#allocation9_spill] sm:$0xff]  ;;  %s2520_s7 = scalar_lea.vmem %s4335_s26, 4608 }
 0x244   : > { %2407 = vmatprep.mubr.msk.f32.mxu0 %vm1821_vm8, %v1777_v61  ;;  %2434 = vmatprep.mubr.msk.f32.mxu1 %vm1821_vm8, %v1795_v57  ;;  %v1704_v13 = vsel %vm1694_vm5, %v1667_v22, %v1132_v2  ;;  %v370_v2 = vld [vmem:[%s2665_s28 + $0xad] sm:$0xff]  ;;  %v1594_v45 = vsel %vm1583_vm2, %v1557_v32, %v4524_v19  ;;  %v4526_v61 = vld [vmem:[#allocation84_spill] sm:$0xff]  ;;  %v4531_v22 = vld [vmem:[#allocation45_spill] sm:$0xff]  ;;  %v1522_v32 = vsel %vm1509_vm0, %v181_v10, %v4536_v38  ;;  %p2521_p11 = scmp.ne.s32.totalorder %s4335_s26, %s2520_s7 }
 0x245   : > { %v1060_v59 = vpop.permute.xlu1 %1059  ;;  %v1024_v31 = vpop.permute.xlu0 %1023  ;;  %v1741_v21 = vsel %vm1731_vm6, %v1704_v13, %v1276_v16  ;;  %v197_v16 = vld [vmem:[%s2665_s28 + $0xe0] sm:$0xff]  ;;  %v1631_v51 = vsel %vm1620_vm3, %v1594_v45, %v4526_v61  ;;  %v4538_v19 = vld [vmem:[#allocation36_spill] sm:$0xff] }
 0x246   : > { %v1538_v1 = vsel %vm1509_vm0, %v197_v16, %v4521_v58  ;;  %v1668_v36 = vsel %vm1657_vm4, %v1631_v51, %v1024_v31  ;;  %v4529_v31 = vld [vmem:[#allocation21_spill] sm:$0xff]  ;;  %v1559_v45 = vsel %vm1546_vm1, %v1522_v32, %v4538_v19  ;;  %p2522_p12 = pnand %p2521_p11, %p2650_p5 }
 0x247   : > { %1183 = vrot.lane.b32.xlu1 %v352_v60, %s2587_s24  ;;  %1147 = vrot.lane.b32.xlu0 %v2519_v3, %s2587_s24  ;;  %v1575_v53 = vsel %vm1546_vm1, %v1538_v1, %v4523_v26  ;;  %v1539_v7 = vsel %vm1509_vm0, %v198_v63, %v4529_v31  ;;  %v4537_v26 = vld [vmem:[#allocation24_spill] sm:$0xff]  ;;  %v4541_v61 = vld [vmem:[#allocation73_spill] sm:$0xff] }
 0x248   : > { %v1612_v39 = vsel %vm1583_vm2, %v1575_v53, %v4525_v43  ;;  %v1576_v3 = vsel %vm1546_vm1, %v1539_v7, %v4531_v22  ;;  %v1540_v53 = vsel %vm1509_vm0, %v199_v42, %v4537_v26  ;;  %v4539_v43 = vld [vmem:[#allocation48_spill] sm:$0xff]  ;;  %v4545_v22 = vld [vmem:[#allocation23_spill] sm:$0xff]  ;;  %p2523_p13 = pneg %p2522_p12 }
 0x249   : > { %v1456_v6 = vpop.permute.xlu1 %1455  ;;  %v1420_v41 = vpop.permute.xlu0 %1419  ;;  %v1649_v44 = vsel %vm1620_vm3, %v1612_v39, %v4527_v4  ;;  %v1577_v39 = vsel %vm1546_vm1, %v1540_v53, %v4539_v43 }
 0x24a   : > { %v1796_v34 = vsel %vm1768_vm7, %v1759_v50, %v1456_v6  ;;  %v1778_v9 = vsel %vm1768_vm7, %v1741_v21, %v1420_v41  ;;  %v1686_v24 = vsel %vm1657_vm4, %v1649_v44, %v1060_v59  ;;  %v1521_v59 = vsel %vm1509_vm0, %v180_v47, %v4528_v23  ;;  %v4534_v6 = vld [vmem:[#allocation83_spill] sm:$0xff] }
 0x24b   : > { %1325 = vrot.lane.b32.xlu1 %v387_v54, %s2588_s8  ;;  %1289 = vrot.lane.b32.xlu0 %v369_v17, %s2588_s8  ;;  %v1558_v49 = vsel %vm1546_vm1, %v1521_v59, %v4530_v56  ;;  %v4533_v54 = vld [vmem:[#allocation70_spill] sm:$0xff]  ;;  %v1614_v51 = vsel %vm1583_vm2, %v1577_v39, %v4541_v61  ;;  %v4543_v47 = vld [vmem:[#allocation99_spill] sm:$0xff] }
 0x24c   : > { %2408 = vmatmul.mubr.msk.f32.gmra.mxu0 %vm1821_vm8, %v1778_v9  ;;  %2435 = vmatmul.mubr.msk.f32.gmra.mxu1 %vm1821_vm8, %v1796_v34  ;;  %v1595_v13 = vsel %vm1583_vm2, %v1558_v49, %v4532_v8  ;;  %v1613_v17 = vsel %vm1583_vm2, %v1576_v3, %v4533_v54  ;;  %v4535_v34 = vld [vmem:[#allocation96_spill] sm:$0xff]  ;;  %v1651_v63 = vsel %vm1620_vm3, %v1614_v51, %v4543_v47  ;;  %v4544_v56 = vld [vmem:[#allocation11_spill] sm:$0xff] }
 0x24d   : > { %v1062_v0 = vpop.permute.xlu1 %1061  ;;  %v1026_v28 = vpop.permute.xlu0 %1025  ;;  %v1632_v41 = vsel %vm1620_vm3, %v1595_v13, %v4534_v6  ;;  %v1650_v9 = vsel %vm1620_vm3, %v1613_v17, %v4535_v34  ;;  %v4546_v8 = vld [vmem:[#allocation35_spill] sm:$0xff]  ;;  %v4549_v6 = vld [vmem:[#allocation72_spill] sm:$0xff] }
 0x24e   : > { %v4547_v54 = vld [vmem:[#allocation47_spill] sm:$0xff] }
 0x24f   : > { %1327 = vrot.lane.b32.xlu1 %v388_v40, %s2588_s8  ;;  %1291 = vrot.lane.b32.xlu0 %v370_v2, %s2588_s8  ;;  %v1687_v40 = vsel %vm1657_vm4, %v1650_v9, %v1062_v0  ;;  %v1669_v2 = vsel %vm1657_vm4, %v1632_v41, %v1026_v28  ;;  %s2590_s8 = smov [#allocation2]  }
 0x250   : > { %s2524_s9 = sshll.u32 %s2590_s8, 4  ;;  %s2525_s9 = int_to_ptr.vmem [resolvable:$false] %s2524_s9 }
 0x251   : > { %v1170_v33 = vpop.permute.xlu1 %1169  ;;  %v1134_v27 = vpop.permute.xlu0 %1133  ;;  %s2526_s10 = scalar_lea.vmem %s2525_s9, 9216  ;;  %p2527_p0 = scmp.lt.s32.totalorder %s4335_s26, %s2525_s9 }
 0x252   : > { %v1723_v20 = vsel %vm1694_vm5, %v1686_v24, %v1170_v33  ;;  %v1705_v18 = vsel %vm1694_vm5, %v1668_v36, %v1134_v27  ;;  %v4542_v24 = vld [vmem:[#allocation86_spill] sm:$0xff]  ;;  %p2528_p1 = scmp.lt.s32.totalorder %s2526_s10, %s2520_s7 }
 0x253   : > { %1469 = vrot.lane.b32.xlu1 %v423_v14, %s2589_s19  ;;  %1433 = vrot.lane.b32.xlu0 %v405_v11, %s2589_s19 }
 0x254   : > { %p2529_p2 = por %p2528_p1, %p2527_p0 }
 0x255   : > { %v1172_v46 = vpop.permute.xlu1 %1171  ;;  %v1136_v62 = vpop.permute.xlu0 %1135 }
 0x256   : > { %v1724_v14 = vsel %vm1694_vm5, %v1687_v40, %v1172_v46  ;;  %v1706_v11 = vsel %vm1694_vm5, %v1669_v2, %v1136_v62  ;;  %v4550_v40 = vld [vmem:[#allocation85_spill] sm:$0xff]  ;;  %p2530_p3 = pnand %p2529_p2, %p2523_p13 }
 0x257   : > { %1471 = vrot.lane.b32.xlu1 %v424_v30, %s2589_s19  ;;  %1435 = vrot.lane.b32.xlu0 %v406_v35, %s2589_s19 }
 0x259   : > { %v1314_v48 = vpop.permute.xlu1 %1313  ;;  %v1278_v55 = vpop.permute.xlu0 %1277 }
 0x25a   : > { %v1760_v60 = vsel %vm1731_vm6, %v1723_v20, %v1314_v48  ;;  %v1742_v37 = vsel %vm1731_vm6, %v1705_v18, %v1278_v55 }
 0x25d   : > { %v1316_v15 = vpop.permute.xlu1 %1315  ;;  %v1280_v57 = vpop.permute.xlu0 %1279 }
 0x25e   : > { %v1761_v33 = vsel %vm1731_vm6, %v1724_v14, %v1316_v15  ;;  %v1743_v27 = vsel %vm1731_vm6, %v1706_v11, %v1280_v57  ;;  %v4540_v15 = vld [vmem:[#allocation60_spill] sm:$0xff]  ;;  %v4551_v14 = vld [vmem:[#allocation98_spill] sm:$0xff] }
 0x25f   : > { %v1596_v57 = vsel %vm1583_vm2, %v1559_v45, %v4540_v15 }
 0x260   : > { %v1633_v36 = vsel %vm1620_vm3, %v1596_v57, %v4542_v24  ;;  %v183_v57 = vld [vmem:[%s2665_s28 + $0x70] sm:$0xff]  ;;  %v201_v24 = vld [vmem:[%s2665_s28 + $0x100] sm:$0xff] }
 0x261   : > { %v1458_v25 = vpop.permute.xlu1 %1457  ;;  %v1422_v29 = vpop.permute.xlu0 %1421 }
 0x262   : > { %v1797_v52 = vsel %vm1768_vm7, %v1760_v60, %v1458_v25  ;;  %v1779_v5 = vsel %vm1768_vm7, %v1742_v37, %v1422_v29  ;;  %v182_v60 = vld [vmem:[%s2665_s28 + $0x68] sm:$0xff]  ;;  %v200_v37 = vld [vmem:[%s2665_s28 + $0xf8] sm:$0xff] }
 0x263   : > { %2410 = vmatprep.mubr.msk.f32.mxu0 %vm1821_vm8, %v1779_v5  ;;  %2437 = vmatprep.mubr.msk.f32.mxu1 %vm1821_vm8, %v1797_v52  ;;  %v1523_v49 = vsel %vm1509_vm0, %v182_v60, %v4544_v56  ;;  %v1541_v3 = vsel %vm1509_vm0, %v200_v37, %v4545_v22  ;;  %v4555_v37 = vld [vmem:[#allocation88_spill] sm:$0xff] }
 0x264   : > { %v1560_v13 = vsel %vm1546_vm1, %v1523_v49, %v4546_v8  ;;  %v1578_v17 = vsel %vm1546_vm1, %v1541_v3, %v4547_v54  ;;  %v4559_v8 = vld [vmem:[#allocation101_spill] sm:$0xff] }
 0x265   : > { %v1064_v50 = vpop.permute.xlu1 %1063  ;;  %v1028_v21 = vpop.permute.xlu0 %1027  ;;  %v1615_v41 = vsel %vm1583_vm2, %v1578_v17, %v4549_v6 }
 0x266   : > { %v1688_v20 = vsel %vm1657_vm4, %v1651_v63, %v1064_v50  ;;  %v1670_v18 = vsel %vm1657_vm4, %v1633_v36, %v1028_v21  ;;  %v4548_v50 = vld [vmem:[#allocation59_spill] sm:$0xff]  ;;  %v1652_v11 = vsel %vm1620_vm3, %v1615_v41, %v4551_v14  ;;  %v4553_v36 = vld [vmem:[#allocation38_spill] sm:$0xff]  ;;  %v4560_v14 = vld [vmem:[#allocation13_spill] sm:$0xff] }
 0x267   : > { %v1597_v21 = vsel %vm1583_vm2, %v1560_v13, %v4548_v50  ;;  %v4554_v63 = vld [vmem:[#allocation62_spill] sm:$0xff]  ;;  %v184_v50 = vld [vmem:[%s2665_s28 + $0x78] sm:$0xff] }
 0x268   : > { %v1634_v2 = vsel %vm1620_vm3, %v1597_v21, %v4550_v40  ;;  %v202_v21 = vld [vmem:[%s2665_s28 + $0x108] sm:$0xff] }
 0x269   : > { %v1460_v30 = vpop.permute.xlu1 %1459  ;;  %v1424_v35 = vpop.permute.xlu0 %1423 }
 0x26a   : > { %v1798_v12 = vsel %vm1768_vm7, %v1761_v33, %v1460_v30  ;;  %v1780_v16 = vsel %vm1768_vm7, %v1743_v27, %v1424_v35 }
 0x26b   : > { %2411 = vmatmul.mubr.msk.f32.gmra.mxu0 %vm1821_vm8, %v1780_v16  ;;  %2438 = vmatmul.mubr.msk.f32.gmra.mxu1 %vm1821_vm8, %v1798_v12 }
 0x26d   : > { %v1066_v0 = vpop.permute.xlu1 %1065  ;;  %v1030_v28 = vpop.permute.xlu0 %1029 }
 0x26e   : > { %v1689_v33 = vsel %vm1657_vm4, %v1652_v11, %v1066_v0  ;;  %v1671_v27 = vsel %vm1657_vm4, %v1634_v2, %v1030_v28  ;;  %v4136_v0 = vld [vmem:[%s4384_s2] ss:$0 sm:$0xff]  ;;  %v1525_v11 = vsel %vm1509_vm0, %v184_v50, %v4560_v14 }
 0x271   : > { %v1174_v46 = vpop.permute.xlu1 %1173  ;;  %v1138_v48 = vpop.permute.xlu0 %1137 }
 0x272   : > { %v1725_v25 = vsel %vm1694_vm5, %v1688_v20, %v1174_v46  ;;  %v1707_v29 = vsel %vm1694_vm5, %v1670_v18, %v1138_v48 }
 0x275   : > { %v1176_v62 = vpop.permute.xlu1 %1175  ;;  %v1140_v55 = vpop.permute.xlu0 %1139 }
 0x276   : > { %v1726_v30 = vsel %vm1694_vm5, %v1689_v33, %v1176_v62  ;;  %v1708_v35 = vsel %vm1694_vm5, %v1671_v27, %v1140_v55  ;;  %v4561_v33 = vld [vmem:[#allocation25_spill] sm:$0xff] }
 0x277   : > { %v1543_v27 = vsel %vm1509_vm0, %v202_v21, %v4561_v33  ;;  %v4572_v21 = vld [vmem:[#allocation64_spill] sm:$0xff] }
 0x279   : > { %v1318_v58 = vpop.permute.xlu1 %1317  ;;  %v1282_v1 = vpop.permute.xlu0 %1281 }
 0x27a   : > { %v1762_v52 = vsel %vm1731_vm6, %v1725_v25, %v1318_v58  ;;  %v1744_v5 = vsel %vm1731_vm6, %v1707_v29, %v1282_v1  ;;  %v4556_v29 = vld [vmem:[#allocation26_spill] sm:$0xff] }
 0x27d   : > { %v1320_v4 = vpop.permute.xlu1 %1319  ;;  %v1284_v44 = vpop.permute.xlu0 %1283 }
 0x27e   : > { %v1763_v12 = vsel %vm1731_vm6, %v1726_v30, %v1320_v4  ;;  %v1745_v16 = vsel %vm1731_vm6, %v1708_v35, %v1284_v44  ;;  %v4552_v4 = vld [vmem:[#allocation14_spill] sm:$0xff]  ;;  %v4563_v35 = vld [vmem:[#allocation49_spill] sm:$0xff] }
 0x27f   : > { %v1524_v44 = vsel %vm1509_vm0, %v183_v57, %v4552_v4 }
 0x280   : > { %v1561_v47 = vsel %vm1546_vm1, %v1524_v44, %v4553_v36 }
 0x281   : > { %v1462_v23 = vpop.permute.xlu1 %1461  ;;  %v1426_v59 = vpop.permute.xlu0 %1425  ;;  %v1598_v20 = vsel %vm1583_vm2, %v1561_v47, %v4554_v63 }
 0x282   : > { %v1799_v31 = vsel %vm1768_vm7, %v1762_v52, %v1462_v23  ;;  %v1781_v7 = vsel %vm1768_vm7, %v1744_v5, %v1426_v59  ;;  %v1635_v25 = vsel %vm1620_vm3, %v1598_v20, %v4555_v37  ;;  %v1542_v52 = vsel %vm1509_vm0, %v201_v24, %v4556_v29  ;;  %v4557_v23 = vld [vmem:[#allocation50_spill] sm:$0xff] }
 0x283   : > { %2413 = vmatprep.mubr.msk.f32.mxu0 %vm1821_vm8, %v1781_v7  ;;  %2440 = vmatprep.mubr.msk.f32.mxu1 %vm1821_vm8, %v1799_v31  ;;  %v1579_v59 = vsel %vm1546_vm1, %v1542_v52, %v4557_v23  ;;  %v4558_v7 = vld [vmem:[#allocation75_spill] sm:$0xff] }
 0x284   : > { %v1616_v56 = vsel %vm1583_vm2, %v1579_v59, %v4558_v7  ;;  %v203_v23 = vld [vmem:[%s2665_s28 + $0x110] sm:$0xff]  ;;  %v4568_v7 = vld [vmem:[#allocation16_spill] sm:$0xff] }
 0x285   : > { %v1068_v34 = vpop.permute.xlu1 %1067  ;;  %v1032_v9 = vpop.permute.xlu0 %1031  ;;  %v1653_v13 = vsel %vm1620_vm3, %v1616_v56, %v4559_v8  ;;  %v204_v8 = vld [vmem:[%s2665_s28 + $0x118] sm:$0xff] }
 0x286   : > { %v1672_v5 = vsel %vm1657_vm4, %v1635_v25, %v1032_v9  ;;  %v1690_v17 = vsel %vm1657_vm4, %v1653_v13, %v1068_v34  ;;  %v4562_v34 = vld [vmem:[#allocation37_spill] sm:$0xff]  ;;  %v4570_v13 = vld [vmem:[#allocation40_spill] sm:$0xff] }
 0x287   : > { %v1562_v30 = vsel %vm1546_vm1, %v1525_v11, %v4562_v34  ;;  %v4574_v11 = vld [vmem:[#allocation90_spill] sm:$0xff]  ;;  %v4575_v34 = vld [vmem:[#allocation15_spill] sm:$0xff] }
 0x289   : > { %v1464_v46 = vpop.permute.xlu1 %1463  ;;  %v1428_v48 = vpop.permute.xlu0 %1427 }
 0x28a   : > { %v1800_v10 = vsel %vm1768_vm7, %v1763_v12, %v1464_v46  ;;  %v1782_v42 = vsel %vm1768_vm7, %v1745_v16, %v1428_v48  ;;  %v1580_v12 = vsel %vm1546_vm1, %v1543_v27, %v4563_v35  ;;  %v4564_v16 = vld [vmem:[#allocation61_spill] sm:$0xff]  ;;  %v4565_v48 = vld [vmem:[#allocation74_spill] sm:$0xff]  ;;  %v4576_v35 = vld [vmem:[#allocation27_spill] sm:$0xff] }
 0x28b   : > { %2414 = vmatmul.mubr.msk.f32.gmra.mxu0 %vm1821_vm8, %v1782_v42  ;;  %2441 = vmatmul.mubr.msk.f32.gmra.mxu1 %vm1821_vm8, %v1800_v10  ;;  %v1599_v46 = vsel %vm1583_vm2, %v1562_v30, %v4564_v16  ;;  %v1617_v10 = vsel %vm1583_vm2, %v1580_v12, %v4565_v48  ;;  %v1545_v12 = vsel %vm1509_vm0, %v204_v8, %v4576_v35  ;;  %v4577_v48 = vld [vmem:[#allocation39_spill] sm:$0xff] }
 0x28c   : > { %v2397_v28 = vpop.f32.mrf.mxu0  ;;  %v2424_v62 = vpop.f32.mrf.mxu1 }
 0x28d   : > { %v2002_v55 = vadd.f32 %v2397_v28, %v4136_v0  ;;  %v2092_v58 = vadd.f32 %v2424_v62, %v4136_v0  ;;  %v1070_v1 = vpop.permute.xlu1 %1069  ;;  %v1034_v38 = vpop.permute.xlu0 %1033  ;;  %v4566_v62 = vld [vmem:[#allocation87_spill] sm:$0xff] }
 0x28e   : > { %v1996_v32 = vpop.f32.mrf.mxu0  ;;  %v2086_v26 = vpop.f32.mrf.mxu1 }
 0x28f   : > { %2176 = vst [vmem:[%s4142_s25 + $0x8] sm:$0xff] %v2002_v55  ;;  %2194 = vst [vmem:[%s4142_s25 + $0x98] sm:$0xff] %v2092_v58  ;;  %v1997_v53 = vadd.f32 %v4136_v0, %v1996_v32  ;;  %v2087_v19 = vadd.f32 %v4136_v0, %v2086_v26  ;;  %v1636_v55 = vsel %vm1620_vm3, %v1599_v46, %v4566_v62  ;;  %v4567_v58 = vld [vmem:[#allocation100_spill] sm:$0xff]  ;;  %v4578_v62 = vld [vmem:[#allocation51_spill] sm:$0xff] }
 0x290   : > { %v1654_v32 = vsel %vm1620_vm3, %v1617_v10, %v4567_v58 }
 0x291   : > { %2175 = vst [vmem:[%s4142_s25] sm:$0xff] %v1997_v53  ;;  %2193 = vst [vmem:[%s4142_s25 + $0x90] sm:$0xff] %v2087_v19  ;;  %v1178_v45 = vpop.permute.xlu1 %1177  ;;  %v1142_v43 = vpop.permute.xlu0 %1141  ;;  %v1691_v26 = vsel %vm1657_vm4, %v1654_v32, %v1070_v1  ;;  %v1673_v53 = vsel %vm1657_vm4, %v1636_v55, %v1034_v38  ;;  %v1582_v55 = vsel %vm1546_vm1, %v1545_v12, %v4578_v62  ;;  %v4579_v32 = vld [vmem:[#allocation63_spill] sm:$0xff] }
 0x292   : > { %v1709_v31 = vsel %vm1694_vm5, %v1672_v5, %v1142_v43  ;;  %v1727_v6 = vsel %vm1694_vm5, %v1690_v17, %v1178_v45  ;;  %v185_v5 = vld [vmem:[%s2665_s28 + $0x80] sm:$0xff]  ;;  %v4571_v17 = vld [vmem:[#allocation52_spill] sm:$0xff] }
 0x293   : > { %v1526_v56 = vsel %vm1509_vm0, %v185_v5, %v4568_v7 }
 0x295   : > { %v1180_v39 = vpop.permute.xlu1 %1179  ;;  %v1144_v15 = vpop.permute.xlu0 %1143 }
 0x296   : > { %v1728_v19 = vsel %vm1694_vm5, %v1691_v26, %v1180_v39  ;;  %v1710_v45 = vsel %vm1694_vm5, %v1673_v53, %v1144_v15  ;;  %v4580_v53 = vld [vmem:[#allocation76_spill] sm:$0xff] }
 0x299   : > { %v1322_v61 = vpop.permute.xlu1 %1321  ;;  %v1286_v51 = vpop.permute.xlu0 %1285 }
 0x29a   : > { %v1746_v49 = vsel %vm1731_vm6, %v1709_v31, %v1286_v51  ;;  %v1764_v41 = vsel %vm1731_vm6, %v1727_v6, %v1322_v61 }
 0x29d   : > { %v1288_v18 = vpop.permute.xlu1 %1287  ;;  %v4158_v60 = vpop.permute.xlu0 %927 }
 0x29e   : > { %v1747_v61 = vsel %vm1731_vm6, %v1710_v45, %v1288_v18 }
 0x2a1   : > { %v1430_v22 = vpop.permute.xlu1 %1429  ;;  %v1324_v3 = vpop.permute.xlu0 %1323 }
 0x2a2   : > { %v1783_v54 = vsel %vm1768_vm7, %v1746_v49, %v1430_v22  ;;  %v1765_v51 = vsel %vm1731_vm6, %v1728_v19, %v1324_v3  ;;  %v4569_v49 = vld [vmem:[#allocation28_spill] sm:$0xff]  ;;  %v186_v3 = vld [vmem:[%s2665_s28 + $0x88] sm:$0xff]  ;;  %v1619_v19 = vsel %vm1583_vm2, %v1582_v55, %v4580_v53  ;;  %s2469_s28 = smul.u32 4608, %s2633_s16  ;;  %s4341_s16 = scalar_lea.sflag [#allocation3], %s161_s5 }
 0x2a3   : > { %2416 = vmatprep.mubr.msk.f32.mxu0 %vm1821_vm8, %v1783_v54  ;;  %v1544_v22 = vsel %vm1509_vm0, %v203_v23, %v4569_v49  ;;  %v1563_v54 = vsel %vm1546_vm1, %v1526_v56, %v4570_v13  ;;  %v1527_v30 = vsel %vm1509_vm0, %v186_v3, %v4575_v34 }
 0x2a4   : > { %v1581_v50 = vsel %vm1546_vm1, %v1544_v22, %v4571_v17  ;;  %v1600_v6 = vsel %vm1583_vm2, %v1563_v54, %v4572_v21  ;;  %v1564_v10 = vsel %vm1546_vm1, %v1527_v30, %v4577_v48  ;;  %s4329_s4 = scalar_lea.hbm %s4385_s3, %s2469_s28 }
 0x2a5   : > { %v4180_v9 = vpop.permute.xlu1 %929  ;;  %v1466_v40 = vpop.permute.xlu0 %1465  ;;  %v1637_v33 = vsel %vm1620_vm3, %v1600_v6, %v4574_v11  ;;  %v1601_v26 = vsel %vm1583_vm2, %v1564_v10, %v4579_v32 }
 0x2a6   : > { %v1801_v2 = vsel %vm1768_vm7, %v1764_v41, %v1466_v40  ;;  %v4573_v41 = vld [vmem:[#allocation77_spill] sm:$0xff] }
 0x2a7   : > { %2443 = vmatprep.mubr.msk.f32.mxu1 %vm1821_vm8, %v1801_v2  ;;  %v1618_v40 = vsel %vm1583_vm2, %v1581_v50, %v4573_v41 }
 0x2a8   : > { %v1655_v27 = vsel %vm1620_vm3, %v1618_v40, %v4158_v60 }
 0x2a9   : > { %v1072_v42 = vpop.permute.xlu1 %1071  ;;  %v1036_v28 = vpop.permute.xlu0 %1035 }
 0x2aa   : > { %v1692_v16 = vsel %vm1657_vm4, %v1655_v27, %v1072_v42  ;;  %v1674_v46 = vsel %vm1657_vm4, %v1637_v33, %v1036_v28 }
 0x2ac   : > { %v2400_v43 = vpop.f32.mrf.mxu0  ;;  %v2427_v57 = vpop.f32.mrf.mxu1 }
 0x2ad   : > { %v2012_v4 = vadd.f32 %v2400_v43, %v4136_v0  ;;  %v2102_v1 = vadd.f32 %v2427_v57, %v4136_v0  ;;  %v1468_v44 = vpop.permute.xlu1 %1467  ;;  %v1432_v24 = vpop.permute.xlu0 %1431  ;;  %v4581_v57 = vld [vmem:[#allocation89_spill] sm:$0xff] }
 0x2ae   : > { %v1802_v38 = vsel %vm1768_vm7, %v1765_v51, %v1468_v44  ;;  %v1784_v39 = vsel %vm1768_vm7, %v1747_v61, %v1432_v24  ;;  %v2006_v36 = vpop.f32.mrf.mxu0  ;;  %v2096_v15 = vpop.f32.mrf.mxu1  ;;  %v1638_v61 = vsel %vm1620_vm3, %v1601_v26, %v4581_v57  ;;  %v1656_v51 = vsel %vm1620_vm3, %v1619_v19, %v4180_v9 }
 0x2af   : > { %2178 = vst [vmem:[%s4142_s25 + $0x18] sm:$0xff] %v2012_v4  ;;  %2196 = vst [vmem:[%s4142_s25 + $0xa8] sm:$0xff] %v2102_v1  ;;  %v2007_v47 = vadd.f32 %v4136_v0, %v2006_v36  ;;  %v2097_v63 = vadd.f32 %v4136_v0, %v2096_v15  ;;  %2417 = vmatmul.mubr.msk.f32.gmra.mxu0 %vm1821_vm8, %v1784_v39  ;;  %2444 = vmatmul.mubr.msk.f32.gmra.mxu1 %vm1821_vm8, %v1802_v38 }
 0x2b1   : > { %2177 = vst [vmem:[%s4142_s25 + $0x10] sm:$0xff] %v2007_v47  ;;  %2195 = vst [vmem:[%s4142_s25 + $0xa0] sm:$0xff] %v2097_v63  ;;  %v1074_v20 = vpop.permute.xlu1 %1073  ;;  %v1038_v18 = vpop.permute.xlu0 %1037 }
 0x2b2   : > { %v1693_v44 = vsel %vm1657_vm4, %v1656_v51, %v1074_v20  ;;  %v1675_v24 = vsel %vm1657_vm4, %v1638_v61, %v1038_v18 }
 0x2b5   : > { %v1182_v37 = vpop.permute.xlu1 %1181  ;;  %v1146_v25 = vpop.permute.xlu0 %1145 }
 0x2b6   : > { %v1729_v58 = vsel %vm1694_vm5, %v1692_v16, %v1182_v37  ;;  %v1711_v60 = vsel %vm1694_vm5, %v1674_v46, %v1146_v25 }
 0x2b9   : > { %v1184_v29 = vpop.permute.xlu1 %1183  ;;  %v1148_v52 = vpop.permute.xlu0 %1147 }
 0x2ba   : > { %v1730_v38 = vsel %vm1694_vm5, %v1693_v44, %v1184_v29  ;;  %v1712_v39 = vsel %vm1694_vm5, %v1675_v24, %v1148_v52 }
 0x2bd   : > { %v1326_v59 = vpop.permute.xlu1 %1325  ;;  %v1290_v31 = vpop.permute.xlu0 %1289 }
 0x2be   : > { %v1766_v42 = vsel %vm1731_vm6, %v1729_v58, %v1326_v59  ;;  %v1748_v28 = vsel %vm1731_vm6, %v1711_v60, %v1290_v31 }
 0x2c1   : > { %v1328_v2 = vpop.permute.xlu1 %1327  ;;  %v1292_v14 = vpop.permute.xlu0 %1291 }
 0x2c2   : > { %v1767_v9 = vsel %vm1731_vm6, %v1730_v38, %v1328_v2  ;;  %v1749_v36 = vsel %vm1731_vm6, %v1712_v39, %v1292_v14 }
 0x2c5   : > { %v1470_v45 = vpop.permute.xlu1 %1469  ;;  %v1434_v43 = vpop.permute.xlu0 %1433 }
 0x2c6   : > { %v1803_v4 = vsel %vm1768_vm7, %v1766_v42, %v1470_v45  ;;  %v1785_v1 = vsel %vm1768_vm7, %v1748_v28, %v1434_v43 }
 0x2c7   : > { %2419 = vmatprep.mubr.msk.f32.mxu0 %vm1821_vm8, %v1785_v1  ;;  %2446 = vmatprep.mubr.msk.f32.mxu1 %vm1821_vm8, %v1803_v4 }
 0x2c9   : > { %v1472_v15 = vpop.permute.xlu1 %1471  ;;  %v1436_v47 = vpop.permute.xlu0 %1435 }
 0x2ca   : > { %v1804_v63 = vsel %vm1768_vm7, %v1767_v9, %v1472_v15  ;;  %v1786_v20 = vsel %vm1768_vm7, %v1749_v36, %v1436_v47 }
 0x2cb   : > { %2420 = vmatmul.mubr.msk.f32.gmra.mxu0 %vm1821_vm8, %v1786_v20  ;;  %2447 = vmatmul.mubr.msk.f32.gmra.mxu1 %vm1821_vm8, %v1804_v63 }
 0x2cc   : > { %v2403_v18 = vpop.f32.mrf.mxu0  ;;  %v2430_v37 = vpop.f32.mrf.mxu1 }
 0x2cd   : > { %v2022_v25 = vadd.f32 %v2403_v18, %v4136_v0  ;;  %v2112_v29 = vadd.f32 %v2430_v37, %v4136_v0 }
 0x2ce   : > { %v2016_v52 = vpop.f32.mrf.mxu0  ;;  %v2106_v5 = vpop.f32.mrf.mxu1 }
 0x2cf   : > { %2180 = vst [vmem:[%s4142_s25 + $0x28] sm:$0xff] %v2022_v25  ;;  %2198 = vst [vmem:[%s4142_s25 + $0xb8] sm:$0xff] %v2112_v29  ;;  %v2017_v23 = vadd.f32 %v4136_v0, %v2016_v52  ;;  %v2107_v59 = vadd.f32 %v4136_v0, %v2106_v5 }
 0x2d1   : > { %2179 = vst [vmem:[%s4142_s25 + $0x20] sm:$0xff] %v2017_v23  ;;  %2197 = vst [vmem:[%s4142_s25 + $0xb0] sm:$0xff] %v2107_v59 }
 0x2ec   : > { %v2406_v31 = vpop.f32.mrf.mxu0  ;;  %v2433_v7 = vpop.f32.mrf.mxu1 }
 0x2ed   : > { %v2032_v56 = vadd.f32 %v2406_v31, %v4136_v0  ;;  %v2122_v49 = vadd.f32 %v2433_v7, %v4136_v0 }
 0x2ee   : > { %v2026_v22 = vpop.f32.mrf.mxu0  ;;  %v2116_v3 = vpop.f32.mrf.mxu1 }
 0x2ef   : > { %2182 = vst [vmem:[%s4142_s25 + $0x38] sm:$0xff] %v2032_v56  ;;  %2200 = vst [vmem:[%s4142_s25 + $0xc8] sm:$0xff] %v2122_v49  ;;  %v2027_v8 = vadd.f32 %v4136_v0, %v2026_v22  ;;  %v2117_v13 = vadd.f32 %v4136_v0, %v2116_v3 }
 0x2f1   : > { %2181 = vst [vmem:[%s4142_s25 + $0x30] sm:$0xff] %v2027_v8  ;;  %2199 = vst [vmem:[%s4142_s25 + $0xc0] sm:$0xff] %v2117_v13 }
 0x30c   : > { %v2409_v54 = vpop.f32.mrf.mxu0  ;;  %v2436_v17 = vpop.f32.mrf.mxu1 }
 0x30d   : > { %v2042_v50 = vadd.f32 %v2409_v54, %v4136_v0  ;;  %v2132_v21 = vadd.f32 %v2436_v17, %v4136_v0 }
 0x30e   : > { %v2036_v6 = vpop.f32.mrf.mxu0  ;;  %v2126_v41 = vpop.f32.mrf.mxu1 }
 0x30f   : > { %2184 = vst [vmem:[%s4142_s25 + $0x48] sm:$0xff] %v2042_v50  ;;  %2202 = vst [vmem:[%s4142_s25 + $0xd8] sm:$0xff] %v2132_v21  ;;  %v2037_v40 = vadd.f32 %v4136_v0, %v2036_v6  ;;  %v2127_v2 = vadd.f32 %v4136_v0, %v2126_v41 }
 0x311   : > { %2183 = vst [vmem:[%s4142_s25 + $0x40] sm:$0xff] %v2037_v40  ;;  %2201 = vst [vmem:[%s4142_s25 + $0xd0] sm:$0xff] %v2127_v2 }
 0x32b   : > { %v2412_v14 = vpop.f32.mrf.mxu0  ;;  %v2439_v11 = vpop.f32.mrf.mxu1 }
 0x32c   : > { %v2052_v33 = vadd.f32 %v2412_v14, %v4136_v0  ;;  %v2142_v27 = vadd.f32 %v2439_v11, %v4136_v0 }
 0x32d   : > { %v2046_v34 = vpop.f32.mrf.mxu0  ;;  %v2136_v30 = vpop.f32.mrf.mxu1 }
 0x32e   : > { %2186 = vst [vmem:[%s4142_s25 + $0x58] sm:$0xff] %v2052_v33  ;;  %2204 = vst [vmem:[%s4142_s25 + $0xe8] sm:$0xff] %v2142_v27  ;;  %v2047_v35 = vadd.f32 %v4136_v0, %v2046_v34  ;;  %v2137_v12 = vadd.f32 %v4136_v0, %v2136_v30 }
 0x330   : > { %2185 = vst [vmem:[%s4142_s25 + $0x50] sm:$0xff] %v2047_v35  ;;  %2203 = vst [vmem:[%s4142_s25 + $0xe0] sm:$0xff] %v2137_v12 }
 0x34b   : > { %v2415_v16 = vpop.f32.mrf.mxu0  ;;  %v2442_v46 = vpop.f32.mrf.mxu1 }
 0x34c   : > { %v2062_v48 = vadd.f32 %v2415_v16, %v4136_v0  ;;  %v2152_v10 = vadd.f32 %v2442_v46, %v4136_v0 }
 0x34d   : > { %v2056_v62 = vpop.f32.mrf.mxu0  ;;  %v2146_v55 = vpop.f32.mrf.mxu1 }
 0x34e   : > { %2188 = vst [vmem:[%s4142_s25 + $0x68] sm:$0xff] %v2062_v48  ;;  %2206 = vst [vmem:[%s4142_s25 + $0xf8] sm:$0xff] %v2152_v10  ;;  %v2057_v58 = vadd.f32 %v4136_v0, %v2056_v62  ;;  %v2147_v60 = vadd.f32 %v4136_v0, %v2146_v55 }
 0x350   : > { %2187 = vst [vmem:[%s4142_s25 + $0x60] sm:$0xff] %v2057_v58  ;;  %2205 = vst [vmem:[%s4142_s25 + $0xf0] sm:$0xff] %v2147_v60 }
 0x36f   : > { %v2418_v32 = vpop.f32.mrf.mxu0  ;;  %v2445_v26 = vpop.f32.mrf.mxu1 }
 0x370   : > { %v2072_v53 = vadd.f32 %v2418_v32, %v4136_v0  ;;  %v2162_v19 = vadd.f32 %v2445_v26, %v4136_v0 }
 0x371   : > { %v2066_v42 = vpop.f32.mrf.mxu0  ;;  %v2156_v28 = vpop.f32.mrf.mxu1 }
 0x372   : > { %2190 = vst [vmem:[%s4142_s25 + $0x78] sm:$0xff] %v2072_v53  ;;  %2208 = vst [vmem:[%s4142_s25 + $0x108] sm:$0xff] %v2162_v19  ;;  %v2067_v45 = vadd.f32 %v4136_v0, %v2066_v42  ;;  %v2157_v43 = vadd.f32 %v4136_v0, %v2156_v28 }
 0x374   : > { %2189 = vst [vmem:[%s4142_s25 + $0x70] sm:$0xff] %v2067_v45  ;;  %2207 = vst [vmem:[%s4142_s25 + $0x100] sm:$0xff] %v2157_v43 }
 0x38b   : > { %v2421_v57 = vpop.f32.mrf.mxu0  ;;  %v2448_v61 = vpop.f32.mrf.mxu1 }
 0x38c   : > { %v2082_v51 = vadd.f32 %v2421_v57, %v4136_v0  ;;  %v2172_v4 = vadd.f32 %v2448_v61, %v4136_v0 }
 0x38d   : > { %v2076_v1 = vpop.f32.mrf.mxu0  ;;  %v2166_v44 = vpop.f32.mrf.mxu1 }
 0x38e   : > { %2192 = vst [vmem:[%s4142_s25 + $0x88] sm:$0xff] %v2082_v51  ;;  %2210 = vst [vmem:[%s4142_s25 + $0x118] sm:$0xff] %v2172_v4  ;;  %v2077_v24 = vadd.f32 %v4136_v0, %v2076_v1  ;;  %v2167_v38 = vadd.f32 %v4136_v0, %v2166_v44 }
 0x390   : > { %2191 = vst [vmem:[%s4142_s25 + $0x80] sm:$0xff] %v2077_v24  ;;  %2209 = vst [vmem:[%s4142_s25 + $0x110] sm:$0xff] %v2167_v38 }
 0x391   : > { %2533 = shalt.err (!%p2530_p3)
}
 0x392   : > { %s2534_s11 = scalar_lea.hbm %s4329_s4, 4608  ;;  %s2538_s5 = scalar_lea.hbm %s4385_s3, 9216 }
 0x393   : > { %p2535_p4 = scmp.ne.s32.totalorder %s4329_s4, %s2534_s11  ;;  %p2539_p9 = scmp.lt.s32.totalorder %s4329_s4, %s4385_s3 }
 0x394   : > { %p2540_p10 = scmp.lt.s32.totalorder %s2538_s5, %s2534_s11 }
 0x395   : > { %p2536_p7 = pnand %p2535_p4, %p2650_p5 }
 0x396   : > { %p2541_p11 = por %p2540_p10, %p2539_p9 }
 0x397   : > { %p2537_p8 = pneg %p2536_p7 }
 0x399   : > { %p2542_p12 = pnand %p2541_p11, %p2537_p8 }
 0x39b   : > { %2545 = shalt.err (!%p2542_p12)
}
 0x39c   : > { %s2591_s24 = smov 128  }
 0x39d   : > { %2470 = dma.vmem_to_hbm [thread:$0]  (%p2650_p5), %s4335_s26, 4608, %s4329_s4, %s4341_s16, %s2591_s24, %s2591_s24, %s2582_s29  }
 0x39e PF: > { %p2476_p13 = scmp.ge.s32.totalorder %s2580_s15, 2  ;;  %s2240_s25 = sand.u32 1, %s2568_s12  }
 0x39f   : > { %s2241_s28 = scalar_lea.sflag [#allocation3], %s2240_s25 }
 0x3a0   : > { %p2473_p0 = pnand %p2476_p13, %p2654_p6 }
 0x3a2   : > { %p2474_p1 = pneg %p2473_p0 }
 0x3a4   : > { %2563 = dma.done.wait (%p2474_p1), %s2241_s28, 4608  }
 0x3a5   : > { %2565 = vsyncadd (%p2474_p1), %s2241_s28, 4294962688  ;;  %p13_p2 = scmp.ge.s32.totalorder %s2637_s18, 4   ;;  %s4582_s12 = smov %s2572_s13 }
 0x3a6   : > { %s4583_s13 = smov %s2576_s14  ;;  %s4584_s14 = smov %s2648_s21 }
 0x3a7   : > { %s4585_s15 = smov %s2637_s18  ;;  %15 = sbr.rel (!%p13_p2) target bundleno = 3 (0x3), region = 67 }
 0x3ac   :  { %2246 = vsyncpa [#allocation3], 1 }
 0x3ad   :  { %2248 = vsyncpa [#allocation3 + $0x1], 1 }

</bundles_post_ra>
